<compile_context>
chip_gen: v7x
topology: tpu7x:2x2x1
jax: 0.10.0
libtpu: 0.0.40
codegen_flags: <defaults>
</compile_context>

<pallas_src>
import functools

import jax
import jax.numpy as jnp
import numpy as np
from jax.experimental import pallas as pl
from jax.experimental.pallas import tpu as pltpu

NEG_BIAS = -9e15  # plain Python float -> jaxpr literal


# ---------------------------------------------------------------------------
# Fused kernel: both HyperGAT layers, block_b docs per grid step (batched).
# ---------------------------------------------------------------------------
def _document_graph_kernel(hid_ref, ht_ref, consts_ref, vecs1_ref, w_ref,
                           vecs2_ref, v3b_ref, out_ref,
                           *, alpha1: float, alpha2: float):
    bb, n, f0 = hid_ref.shape
    e = ht_ref.shape[1]
    h = w_ref.shape[1]
    h_pad = out_ref.shape[-1]

    x0 = hid_ref[...]                                      # (bb, n, f0) f32
    ht = ht_ref[...].astype(jnp.float32)                   # (bb, e, n)
    mask_en = ht > 0.0                                     # (bb, e, n)
    mask_ne = jnp.swapaxes(ht, 1, 2) > 0.0                 # (bb, n, e) in-kernel transpose

    vecs1 = vecs1_ref[...]                                 # (3, f0)   layer-1 folded vecs
    vecs2 = vecs2_ref[...]                                 # (2, f0)   layer-2 folded vecs
    v3b = v3b_ref[...]                                     # (1, h)    layer-2 v3
    w = w_ref[...]                                         # (f0, h)   layer-2 transfer W
    c0_1 = consts_ref[0]                                   # scalar (SMEM)
    c0_2 = consts_ref[1]                                   # scalar (SMEM)

    def softmax_lanes(z):                                  # softmax over last (lane) axis
        m = jnp.max(z, axis=-1, keepdims=True)
        p = jnp.exp(z - m)
        s = jnp.sum(p, axis=-1, keepdims=True)
        return p * pl.reciprocal(s, approx=True)

    def layer(x, xt, c0, v1, v2, v3, alpha):
        # x: (bb,n,fin) drives the logits; xt: (bb,n,fout) values aggregated.
        # v1, v2: (1, fin); v3: (1, fout); c0 scalar.
        leaky = lambda u: jnp.where(u > 0, u, alpha * u)
        fin, fout = x.shape[-1], xt.shape[-1]

        # ---- node -> hyperedge attention (softmax over nodes, lane axis) ----
        v1b = jnp.broadcast_to(v1[None], (bb, 1, fin))
        s1 = leaky(c0 + jnp.einsum("bkf,bnf->bkn", v1b, x,
                                   preferred_element_type=jnp.float32))    # (bb,1,n)
        z1 = jnp.where(mask_en, jnp.broadcast_to(s1, (bb, e, n)), NEG_BIAS)
        att_edge = softmax_lanes(z1)                                        # (bb,e,n)
        edge = jnp.einsum("ben,bnf->bef", att_edge, xt,
                          preferred_element_type=jnp.float32)               # (bb,e,fout)

        # ---- hyperedge -> node attention (softmax over edges, lane axis) ----
        sq = jnp.sum(x * v2[None], axis=-1, keepdims=True)                  # (bb,n,1)
        v3bb = jnp.broadcast_to(v3[None], (bb, 1, fout))
        sy = jnp.einsum("bkf,bef->bke", v3bb, edge,
                        preferred_element_type=jnp.float32)                 # (bb,1,e)
        z2 = jnp.where(mask_ne, leaky(sq + sy), NEG_BIAS)                   # (bb,n,e)
        att_node = softmax_lanes(z2)                                        # (bb,n,e)
        return jnp.einsum("bne,bef->bnf", att_node, edge,
                          preferred_element_type=jnp.float32)               # (bb,n,fout)

    # Layer 1: transfer=False (values = x0), concat=True -> ELU.
    x1 = layer(x0, x0, c0_1, vecs1[0:1, :], vecs1[1:2, :], vecs1[2:3, :], alpha1)
    x1 = jnp.where(x1 > 0, x1, jnp.exp(x1) - 1.0)          # ELU
    # (inter-layer F.dropout: identity in eval mode)

    # Layer 2: transfer=True (values = x1 @ W), concat=False.
    xt2 = jnp.dot(x1.reshape(bb * n, f0), w,
                  preferred_element_type=jnp.float32).reshape(bb, n, h)
    x2 = layer(x1, xt2, c0_2, vecs2[0:1, :], vecs2[1:2, :], v3b, alpha2)

    # Lane-dense store: pad feature dim to a multiple of 128 lanes.
    if h_pad > h:
        x2 = jnp.concatenate(
            [x2, jnp.zeros((bb, n, h_pad - h), jnp.float32)], axis=-1)
    out_ref[...] = x2.astype(out_ref.dtype)


# ---------------------------------------------------------------------------
# DocumentGraph.forward wrapper
# ---------------------------------------------------------------------------
def document_graph_forward(params, inputs, HT, *, block_b=4):
    B, N = inputs.shape
    E = HT.shape[1]
    emb = params["embedding"].astype(jnp.float32)
    F0 = emb.shape[1]
    g1, g2 = params["gat1"], params["gat2"]
    H = g2["weight"].shape[1]
    H_pad = max(128, ((H + 127) // 128) * 128)             # lane-dense output width

    # Fold the attention projections once (tiny matvecs, plain JAX):
    # sum((x @ W2) * a_half, -1) == x @ (W2 @ a_half).
    def fold(g):
        v1 = g["weight2"] @ g["a"][1]
        v2 = g["weight2"] @ g["a2"][0]
        v3 = g["weight3"] @ g["a2"][1]
        c0 = jnp.sum(g["word_context"][0] * g["a"][0])
        return v1, v2, v3, c0

    v1_1, v2_1, v3_1, c0_1 = fold(g1)
    v1_2, v2_2, v3_2, c0_2 = fold(g2)
    vecs1 = jnp.stack([v1_1, v2_1, v3_1]).astype(jnp.float32)       # (3, F0)
    vecs2 = jnp.stack([v1_2, v2_2]).astype(jnp.float32)             # (2, F0)
    v3b = v3_2[None, :].astype(jnp.float32)                         # (1, H)
    consts = jnp.stack([c0_1, c0_2]).astype(jnp.float32)            # (2,) -> SMEM
    w2nd = g2["weight"].astype(jnp.float32)                         # (F0, H)

    # Embedding gather in the wrapper (padding_idx=0 row is just row 0 of the table).
    hidden = jnp.take(emb, inputs.astype(jnp.int32), axis=0)        # (B, N, F0)
    ht_i8 = (HT > 0).astype(jnp.int8)                               # (B, E, N) 1 byte/entry

    assert B % block_b == 0, (B, block_b)
    grid = (B // block_b,)

    kernel = functools.partial(_document_graph_kernel, alpha1=0.1, alpha2=0.2)

    out = pl.pallas_call(
        kernel,
        out_shape=jax.ShapeDtypeStruct((B, N, H_pad), jnp.float32),
        grid=grid,
        in_specs=[
            pl.BlockSpec((block_b, N, F0), lambda b: (b, 0, 0)),    # gathered embeddings
            pl.BlockSpec((block_b, E, N), lambda b: (b, 0, 0)),     # incidence, int8
            pl.BlockSpec(memory_space=pltpu.MemorySpace.SMEM),      # [c0_l1, c0_l2]
            pl.BlockSpec((3, F0), lambda b: (0, 0)),                # layer-1 folded vecs
            pl.BlockSpec((F0, H), lambda b: (0, 0)),                # layer-2 transfer W
            pl.BlockSpec((2, F0), lambda b: (0, 0)),                # layer-2 folded vecs
            pl.BlockSpec((1, H), lambda b: (0, 0)),                 # layer-2 v3
        ],
        out_specs=pl.BlockSpec((block_b, N, H_pad), lambda b: (b, 0, 0)),
        compiler_params=pltpu.CompilerParams(dimension_semantics=("parallel",)),
    )(hidden, ht_i8, consts, vecs1, w2nd, vecs2, v3b)
    return out[..., :H]


# ---------------------------------------------------------------------------
# Pure-JAX reference (original, un-folded math) for correctness checking.
# ---------------------------------------------------------------------------
def hgat_layer_ref(x, adj, params, *, transfer, concat, alpha):
    w2, w3 = params["weight2"], params["weight3"]
    a1, a2, ctx = params["a"], params["a2"], params["word_context"]
    leaky = lambda v: jnp.where(v > 0, v, alpha * v)
    x_4att = x @ w2
    xt = x @ params["weight"] if transfer else x
    c0 = jnp.sum(ctx * a1[0:1])
    s1 = leaky(c0 + jnp.sum(x_4att * a1[1:2], axis=-1))             # (B, N)
    masked1 = jnp.where(adj > 0, jnp.broadcast_to(s1[:, None, :], adj.shape), -9e15)
    att_edge = jax.nn.softmax(masked1, axis=-1)
    edge = att_edge @ xt
    edge_4att = edge @ w3
    sq = jnp.sum(x_4att * a2[0:1], axis=-1)                         # (B, N)
    sy = jnp.sum(edge_4att * a2[1:2], axis=-1)                      # (B, E)
    s2 = leaky(sq[:, :, None] + sy[:, None, :])                     # (B, N, E)
    masked2 = jnp.where(jnp.swapaxes(adj, 1, 2) > 0, s2, -9e15)
    att_node = jax.nn.softmax(masked2, axis=-1)
    node = att_node @ edge
    if concat:
        node = jnp.where(node > 0, node, jnp.exp(node) - 1.0)
    return node


if __name__ == "__main__":
    key = jax.random.PRNGKey(0)
    B, N, E = 16, 16, 8          # batch, nodes per document, hyperedges
    n_node = 40                  # vocabulary size (embedding has n_node+1 rows)
    F0 = 32                      # opt.initialFeatureSize
    H = 32                       # opt.hiddenSize
    stdv = 1.0 / np.sqrt(H)      # DocumentGraph.reset_parameters scale

    keys = jax.random.split(key, 16)
    u = lambda k, shape: jax.random.uniform(k, shape, jnp.float32, -stdv, stdv)

    params = {
        # nn.Embedding(n_node+1, F0, padding_idx=0) -> row 0 zeroed
        "embedding": u(keys[0], (n_node + 1, F0)).at[0].set(0.0),
        "gat1": dict(weight2=u(keys[1], (F0, F0)),
                     weight3=u(keys[2], (F0, F0)),
                     a=u(keys[3], (2, F0)),
                     a2=u(keys[4], (2, F0)),
                     word_context=u(keys[5], (1, F0))),
        "gat2": dict(weight=u(keys[6], (F0, H)),
                     weight2=u(keys[7], (F0, H)),
                     weight3=u(keys[8], (H, H)),
                     a=u(keys[9], (2, H)),
                     a2=u(keys[10], (2, H)),
                     word_context=u(keys[11], (1, H))),
    }

    inputs = jax.random.randint(keys[12], (B, N), 0, n_node + 1)               # token ids
    HT = (jax.random.uniform(keys[13], (B, E, N)) < 0.4).astype(jnp.float32)   # incidence
    HT = HT.at[:, :, 0].set(1.0)   # keep every hyperedge / node non-empty
    HT = HT.at[:, 0, :].set(1.0)

    out = jax.block_until_ready(document_graph_forward(params, inputs, HT, block_b=4))

    # reference check (pure JAX, original parameterization)
    hidden = jnp.take(params["embedding"], inputs, axis=0)
    r1 = hgat_layer_ref(hidden, HT, params["gat1"], transfer=False, concat=True, alpha=0.1)
    r2 = hgat_layer_ref(r1, HT, params["gat2"], transfer=True, concat=False, alpha=0.2)

    assert out.shape == (B, N, H), out.shape
    assert np.isfinite(np.asarray(out)).all()
    np.testing.assert_allclose(np.asarray(out), np.asarray(r2), rtol=2e-3, atol=2e-3)
    # TODO(synk): training-mode dropout (F.dropout / attention dropout) and the
    # loss/optimizer/compute_scores machinery are not part of the forward hot
    # path and are omitted (eval semantics).
    print("KERNEL_OK")
</pallas_src>

<mosaic_0001>
module attributes {stable_mosaic.version = 11 : i64} {
  func.func @_document_graph_kernel(%arg0: i32, %arg1: memref<4x16x32xf32, #tpu.memory_space<vmem>>, %arg2: memref<4x8x16xi8, #tpu.memory_space<vmem>>, %arg3: memref<2xf32, #tpu.memory_space<smem>>, %arg4: memref<3x32xf32, #tpu.memory_space<vmem>>, %arg5: memref<32x32xf32, #tpu.memory_space<vmem>>, %arg6: memref<2x32xf32, #tpu.memory_space<vmem>>, %arg7: memref<1x32xf32, #tpu.memory_space<vmem>>, %arg8: memref<4x16x128xf32, #tpu.memory_space<vmem>>) attributes {dimension_semantics = [#tpu.dimension_semantics<parallel>], iteration_bounds = array<i64: 4>, scalar_prefetch = 0 : i64, scratch_operands = 0 : i64, tpu.core_type = #tpu.core_type<tc>, window_params = [{transform_indices = @transform_0, window_bounds = array<i64: 4, 16, 32>}, {transform_indices = @transform_1, window_bounds = array<i64: 4, 8, 16>}, {transform_indices = @transform_2, window_bounds = array<i64: 2>}, {pipeline_mode = #tpu.pipeline_mode<synchronous>, transform_indices = @transform_3, window_bounds = array<i64: 3, 32>}, {pipeline_mode = #tpu.pipeline_mode<synchronous>, transform_indices = @transform_4, window_bounds = array<i64: 32, 32>}, {pipeline_mode = #tpu.pipeline_mode<synchronous>, transform_indices = @transform_5, window_bounds = array<i64: 2, 32>}, {pipeline_mode = #tpu.pipeline_mode<synchronous>, transform_indices = @transform_6, window_bounds = array<i64: 1, 32>}, {transform_indices = @transform_7, window_bounds = array<i64: 4, 16, 128>}]} {
    %c0 = arith.constant 0 : index
    %c0_0 = arith.constant 0 : index
    %c0_1 = arith.constant 0 : index
    %0 = vector.load %arg1[%c0, %c0_0, %c0_1] : memref<4x16x32xf32, #tpu.memory_space<vmem>>, vector<4x16x32xf32>
    %c0_2 = arith.constant 0 : index
    %c0_3 = arith.constant 0 : index
    %c0_4 = arith.constant 0 : index
    %1 = vector.load %arg2[%c0_2, %c0_3, %c0_4] : memref<4x8x16xi8, #tpu.memory_space<vmem>>, vector<4x8x16xi8>
    %2 = arith.sitofp %1 : vector<4x8x16xi8> to vector<4x8x16xf32>
    %cst = arith.constant 0.000000e+00 : f32
    %3 = vector.broadcast %cst : f32 to vector<4x8x16xf32>
    %4 = arith.cmpf ogt, %2, %3 : vector<4x8x16xf32>
    %5 = tpu.transpose %2, [0, 2, 1] : vector<4x8x16xf32> -> vector<4x16x8xf32>
    %cst_5 = arith.constant 0.000000e+00 : f32
    %6 = vector.broadcast %cst_5 : f32 to vector<4x16x8xf32>
    %7 = arith.cmpf ogt, %5, %6 : vector<4x16x8xf32>
    %c0_6 = arith.constant 0 : index
    %c0_7 = arith.constant 0 : index
    %8 = vector.load %arg4[%c0_6, %c0_7] : memref<3x32xf32, #tpu.memory_space<vmem>>, vector<3x32xf32>
    %c0_8 = arith.constant 0 : index
    %c0_9 = arith.constant 0 : index
    %9 = vector.load %arg6[%c0_8, %c0_9] : memref<2x32xf32, #tpu.memory_space<vmem>>, vector<2x32xf32>
    %c0_10 = arith.constant 0 : index
    %c0_11 = arith.constant 0 : index
    %10 = vector.load %arg7[%c0_10, %c0_11] : memref<1x32xf32, #tpu.memory_space<vmem>>, vector<1x32xf32>
    %c0_12 = arith.constant 0 : index
    %c0_13 = arith.constant 0 : index
    %11 = vector.load %arg5[%c0_12, %c0_13] : memref<32x32xf32, #tpu.memory_space<vmem>>, vector<32x32xf32>
    %c0_14 = arith.constant 0 : index
    %12 = memref.load %arg3[%c0_14] : memref<2xf32, #tpu.memory_space<smem>>
    %c1 = arith.constant 1 : index
    %13 = memref.load %arg3[%c1] : memref<2xf32, #tpu.memory_space<smem>>
    %14 = vector.extract_strided_slice %8 {offsets = [0, 0], sizes = [1, 32], strides = [1, 1]} : vector<3x32xf32> to vector<1x32xf32>
    %15 = vector.extract_strided_slice %8 {offsets = [1, 0], sizes = [1, 32], strides = [1, 1]} : vector<3x32xf32> to vector<1x32xf32>
    %16 = vector.extract_strided_slice %8 {offsets = [2, 0], sizes = [1, 32], strides = [1, 1]} : vector<3x32xf32> to vector<1x32xf32>
    %17 = vector.shape_cast %14 : vector<1x32xf32> to vector<1x1x32xf32>
    %18 = vector.shape_cast %17 : vector<1x1x32xf32> to vector<1x1x32xf32>
    %19 = vector.broadcast %18 : vector<1x1x32xf32> to vector<4x1x32xf32>
    "tpu.trace_start"() <{level = 10 : i32, message = "bkf,bnf->bkn"}> : () -> ()
    %cst_15 = arith.constant dense<0.000000e+00> : vector<4x1x16xf32>
    %20 = tpu.matmul %19, %0, %cst_15 {dimension_numbers = #tpu.dot_dimension_numbers<[2], [2], [1], [1], [0, 0, 0, 1, 1, 1], [0], [0]>} : vector<4x1x32xf32>, vector<4x16x32xf32>, vector<4x1x16xf32> -> vector<4x1x16xf32>
    "tpu.trace_stop"() : () -> ()
    %21 = vector.broadcast %12 : f32 to vector<4x1x16xf32>
    %22 = arith.addf %21, %20 : vector<4x1x16xf32>
    %cst_16 = arith.constant 0.000000e+00 : f32
    %23 = vector.broadcast %cst_16 : f32 to vector<4x1x16xf32>
    %24 = arith.cmpf ogt, %22, %23 : vector<4x1x16xf32>
    %cst_17 = arith.constant 1.000000e-01 : f32
    %25 = vector.broadcast %cst_17 : f32 to vector<4x1x16xf32>
    %26 = arith.mulf %25, %22 : vector<4x1x16xf32>
    %27 = arith.select %24, %22, %26 : vector<4x1x16xi1>, vector<4x1x16xf32>
    %28 = vector.shape_cast %27 : vector<4x1x16xf32> to vector<4x1x16xf32>
    %29 = vector.broadcast %28 : vector<4x1x16xf32> to vector<4x8x16xf32>
    %cst_18 = arith.constant -9.000000e+15 : f32
    %30 = vector.broadcast %cst_18 : f32 to vector<4x8x16xf32>
    %31 = arith.select %4, %29, %30 : vector<4x8x16xi1>, vector<4x8x16xf32>
    %cst_19 = arith.constant dense<0xFF800000> : vector<4x8xf32>
    %32 = vector.multi_reduction <maximumf>, %31, %cst_19 [2] : vector<4x8x16xf32> to vector<4x8xf32>
    %33 = vector.shape_cast %32 : vector<4x8xf32> to vector<4x8x1xf32>
    %34 = vector.broadcast %33 : vector<4x8x1xf32> to vector<4x8x16xf32>
    %35 = arith.subf %31, %34 : vector<4x8x16xf32>
    %36 = math.exp %35 : vector<4x8x16xf32>
    %cst_20 = arith.constant dense<0.000000e+00> : vector<4x8xf32>
    %37 = vector.multi_reduction <add>, %36, %cst_20 [2] : vector<4x8x16xf32> to vector<4x8xf32>
    %38 = vector.shape_cast %37 : vector<4x8xf32> to vector<4x8x1xf32>
    %39 = tpu.reciprocal %38 {approx = true} : vector<4x8x1xf32> -> vector<4x8x1xf32>
    %40 = vector.broadcast %39 : vector<4x8x1xf32> to vector<4x8x16xf32>
    %41 = arith.mulf %36, %40 : vector<4x8x16xf32>
    "tpu.trace_start"() <{level = 10 : i32, message = "ben,bnf->bef"}> : () -> ()
    %cst_21 = arith.constant dense<0.000000e+00> : vector<4x8x32xf32>
    %42 = tpu.matmul %41, %0, %cst_21 {dimension_numbers = #tpu.dot_dimension_numbers<[2], [1], [1], [2], [0, 0, 0, 1, 1, 2], [0], [0]>} : vector<4x8x16xf32>, vector<4x16x32xf32>, vector<4x8x32xf32> -> vector<4x8x32xf32>
    "tpu.trace_stop"() : () -> ()
    %43 = vector.shape_cast %15 : vector<1x32xf32> to vector<1x1x32xf32>
    %44 = vector.broadcast %43 : vector<1x1x32xf32> to vector<4x16x32xf32>
    %45 = arith.mulf %0, %44 : vector<4x16x32xf32>
    %cst_22 = arith.constant dense<0.000000e+00> : vector<4x16xf32>
    %46 = vector.multi_reduction <add>, %45, %cst_22 [2] : vector<4x16x32xf32> to vector<4x16xf32>
    %47 = vector.shape_cast %46 : vector<4x16xf32> to vector<4x16x1xf32>
    %48 = vector.shape_cast %16 : vector<1x32xf32> to vector<1x1x32xf32>
    %49 = vector.shape_cast %48 : vector<1x1x32xf32> to vector<1x1x32xf32>
    %50 = vector.broadcast %49 : vector<1x1x32xf32> to vector<4x1x32xf32>
    "tpu.trace_start"() <{level = 10 : i32, message = "bkf,bef->bke"}> : () -> ()
    %cst_23 = arith.constant dense<0.000000e+00> : vector<4x1x8xf32>
    %51 = tpu.matmul %50, %42, %cst_23 {dimension_numbers = #tpu.dot_dimension_numbers<[2], [2], [1], [1], [0, 0, 0, 1, 1, 1], [0], [0]>} : vector<4x1x32xf32>, vector<4x8x32xf32>, vector<4x1x8xf32> -> vector<4x1x8xf32>
    "tpu.trace_stop"() : () -> ()
    %52 = vector.broadcast %47 : vector<4x16x1xf32> to vector<4x16x8xf32>
    %53 = vector.broadcast %51 : vector<4x1x8xf32> to vector<4x16x8xf32>
    %54 = arith.addf %52, %53 : vector<4x16x8xf32>
    %cst_24 = arith.constant 0.000000e+00 : f32
    %55 = vector.broadcast %cst_24 : f32 to vector<4x16x8xf32>
    %56 = arith.cmpf ogt, %54, %55 : vector<4x16x8xf32>
    %cst_25 = arith.constant 1.000000e-01 : f32
    %57 = vector.broadcast %cst_25 : f32 to vector<4x16x8xf32>
    %58 = arith.mulf %57, %54 : vector<4x16x8xf32>
    %59 = arith.select %56, %54, %58 : vector<4x16x8xi1>, vector<4x16x8xf32>
    %cst_26 = arith.constant -9.000000e+15 : f32
    %60 = vector.broadcast %cst_26 : f32 to vector<4x16x8xf32>
    %61 = arith.select %7, %59, %60 : vector<4x16x8xi1>, vector<4x16x8xf32>
    %cst_27 = arith.constant dense<0xFF800000> : vector<4x16xf32>
    %62 = vector.multi_reduction <maximumf>, %61, %cst_27 [2] : vector<4x16x8xf32> to vector<4x16xf32>
    %63 = vector.shape_cast %62 : vector<4x16xf32> to vector<4x16x1xf32>
    %64 = vector.broadcast %63 : vector<4x16x1xf32> to vector<4x16x8xf32>
    %65 = arith.subf %61, %64 : vector<4x16x8xf32>
    %66 = math.exp %65 : vector<4x16x8xf32>
    %cst_28 = arith.constant dense<0.000000e+00> : vector<4x16xf32>
    %67 = vector.multi_reduction <add>, %66, %cst_28 [2] : vector<4x16x8xf32> to vector<4x16xf32>
    %68 = vector.shape_cast %67 : vector<4x16xf32> to vector<4x16x1xf32>
    %69 = tpu.reciprocal %68 {approx = true} : vector<4x16x1xf32> -> vector<4x16x1xf32>
    %70 = vector.broadcast %69 : vector<4x16x1xf32> to vector<4x16x8xf32>
    %71 = arith.mulf %66, %70 : vector<4x16x8xf32>
    "tpu.trace_start"() <{level = 10 : i32, message = "bne,bef->bnf"}> : () -> ()
    %cst_29 = arith.constant dense<0.000000e+00> : vector<4x16x32xf32>
    %72 = tpu.matmul %71, %42, %cst_29 {dimension_numbers = #tpu.dot_dimension_numbers<[2], [1], [1], [2], [0, 0, 0, 1, 1, 2], [0], [0]>} : vector<4x16x8xf32>, vector<4x8x32xf32>, vector<4x16x32xf32> -> vector<4x16x32xf32>
    %cst_30 = arith.constant 0.000000e+00 : f32
    "tpu.trace_stop"() : () -> ()
    %73 = vector.broadcast %cst_30 : f32 to vector<4x16x32xf32>
    %74 = arith.cmpf ogt, %72, %73 : vector<4x16x32xf32>
    %75 = math.exp %72 : vector<4x16x32xf32>
    %cst_31 = arith.constant 1.000000e+00 : f32
    %76 = vector.broadcast %cst_31 : f32 to vector<4x16x32xf32>
    %77 = arith.subf %75, %76 : vector<4x16x32xf32>
    %78 = arith.select %74, %72, %77 : vector<4x16x32xi1>, vector<4x16x32xf32>
    %79 = vector.shape_cast %78 : vector<4x16x32xf32> to vector<64x32xf32>
    %cst_32 = arith.constant dense<0.000000e+00> : vector<64x32xf32>
    %80 = tpu.matmul %79, %11, %cst_32 {dimension_numbers = #tpu.dot_dimension_numbers<[1], [0], [0], [1], [0, 0, 1, 1], [], []>} : vector<64x32xf32>, vector<32x32xf32>, vector<64x32xf32> -> vector<64x32xf32>
    %81 = vector.shape_cast %80 : vector<64x32xf32> to vector<4x16x32xf32>
    %82 = vector.extract_strided_slice %9 {offsets = [0, 0], sizes = [1, 32], strides = [1, 1]} : vector<2x32xf32> to vector<1x32xf32>
    %83 = vector.extract_strided_slice %9 {offsets = [1, 0], sizes = [1, 32], strides = [1, 1]} : vector<2x32xf32> to vector<1x32xf32>
    %84 = vector.shape_cast %82 : vector<1x32xf32> to vector<1x1x32xf32>
    %85 = vector.shape_cast %84 : vector<1x1x32xf32> to vector<1x1x32xf32>
    %86 = vector.broadcast %85 : vector<1x1x32xf32> to vector<4x1x32xf32>
    "tpu.trace_start"() <{level = 10 : i32, message = "bkf,bnf->bkn"}> : () -> ()
    %cst_33 = arith.constant dense<0.000000e+00> : vector<4x1x16xf32>
    %87 = tpu.matmul %86, %78, %cst_33 {dimension_numbers = #tpu.dot_dimension_numbers<[2], [2], [1], [1], [0, 0, 0, 1, 1, 1], [0], [0]>} : vector<4x1x32xf32>, vector<4x16x32xf32>, vector<4x1x16xf32> -> vector<4x1x16xf32>
    "tpu.trace_stop"() : () -> ()
    %88 = vector.broadcast %13 : f32 to vector<4x1x16xf32>
    %89 = arith.addf %88, %87 : vector<4x1x16xf32>
    %cst_34 = arith.constant 0.000000e+00 : f32
    %90 = vector.broadcast %cst_34 : f32 to vector<4x1x16xf32>
    %91 = arith.cmpf ogt, %89, %90 : vector<4x1x16xf32>
    %cst_35 = arith.constant 2.000000e-01 : f32
    %92 = vector.broadcast %cst_35 : f32 to vector<4x1x16xf32>
    %93 = arith.mulf %92, %89 : vector<4x1x16xf32>
    %94 = arith.select %91, %89, %93 : vector<4x1x16xi1>, vector<4x1x16xf32>
    %95 = vector.shape_cast %94 : vector<4x1x16xf32> to vector<4x1x16xf32>
    %96 = vector.broadcast %95 : vector<4x1x16xf32> to vector<4x8x16xf32>
    %cst_36 = arith.constant -9.000000e+15 : f32
    %97 = vector.broadcast %cst_36 : f32 to vector<4x8x16xf32>
    %98 = arith.select %4, %96, %97 : vector<4x8x16xi1>, vector<4x8x16xf32>
    %cst_37 = arith.constant dense<0xFF800000> : vector<4x8xf32>
    %99 = vector.multi_reduction <maximumf>, %98, %cst_37 [2] : vector<4x8x16xf32> to vector<4x8xf32>
    %100 = vector.shape_cast %99 : vector<4x8xf32> to vector<4x8x1xf32>
    %101 = vector.broadcast %100 : vector<4x8x1xf32> to vector<4x8x16xf32>
    %102 = arith.subf %98, %101 : vector<4x8x16xf32>
    %103 = math.exp %102 : vector<4x8x16xf32>
    %cst_38 = arith.constant dense<0.000000e+00> : vector<4x8xf32>
    %104 = vector.multi_reduction <add>, %103, %cst_38 [2] : vector<4x8x16xf32> to vector<4x8xf32>
    %105 = vector.shape_cast %104 : vector<4x8xf32> to vector<4x8x1xf32>
    %106 = tpu.reciprocal %105 {approx = true} : vector<4x8x1xf32> -> vector<4x8x1xf32>
    %107 = vector.broadcast %106 : vector<4x8x1xf32> to vector<4x8x16xf32>
    %108 = arith.mulf %103, %107 : vector<4x8x16xf32>
    "tpu.trace_start"() <{level = 10 : i32, message = "ben,bnf->bef"}> : () -> ()
    %cst_39 = arith.constant dense<0.000000e+00> : vector<4x8x32xf32>
    %109 = tpu.matmul %108, %81, %cst_39 {dimension_numbers = #tpu.dot_dimension_numbers<[2], [1], [1], [2], [0, 0, 0, 1, 1, 2], [0], [0]>} : vector<4x8x16xf32>, vector<4x16x32xf32>, vector<4x8x32xf32> -> vector<4x8x32xf32>
    "tpu.trace_stop"() : () -> ()
    %110 = vector.shape_cast %83 : vector<1x32xf32> to vector<1x1x32xf32>
    %111 = vector.broadcast %110 : vector<1x1x32xf32> to vector<4x16x32xf32>
    %112 = arith.mulf %78, %111 : vector<4x16x32xf32>
    %cst_40 = arith.constant dense<0.000000e+00> : vector<4x16xf32>
    %113 = vector.multi_reduction <add>, %112, %cst_40 [2] : vector<4x16x32xf32> to vector<4x16xf32>
    %114 = vector.shape_cast %113 : vector<4x16xf32> to vector<4x16x1xf32>
    %115 = vector.shape_cast %10 : vector<1x32xf32> to vector<1x1x32xf32>
    %116 = vector.shape_cast %115 : vector<1x1x32xf32> to vector<1x1x32xf32>
    %117 = vector.broadcast %116 : vector<1x1x32xf32> to vector<4x1x32xf32>
    "tpu.trace_start"() <{level = 10 : i32, message = "bkf,bef->bke"}> : () -> ()
    %cst_41 = arith.constant dense<0.000000e+00> : vector<4x1x8xf32>
    %118 = tpu.matmul %117, %109, %cst_41 {dimension_numbers = #tpu.dot_dimension_numbers<[2], [2], [1], [1], [0, 0, 0, 1, 1, 1], [0], [0]>} : vector<4x1x32xf32>, vector<4x8x32xf32>, vector<4x1x8xf32> -> vector<4x1x8xf32>
    "tpu.trace_stop"() : () -> ()
    %119 = vector.broadcast %114 : vector<4x16x1xf32> to vector<4x16x8xf32>
    %120 = vector.broadcast %118 : vector<4x1x8xf32> to vector<4x16x8xf32>
    %121 = arith.addf %119, %120 : vector<4x16x8xf32>
    %cst_42 = arith.constant 0.000000e+00 : f32
    %122 = vector.broadcast %cst_42 : f32 to vector<4x16x8xf32>
    %123 = arith.cmpf ogt, %121, %122 : vector<4x16x8xf32>
    %cst_43 = arith.constant 2.000000e-01 : f32
    %124 = vector.broadcast %cst_43 : f32 to vector<4x16x8xf32>
    %125 = arith.mulf %124, %121 : vector<4x16x8xf32>
    %126 = arith.select %123, %121, %125 : vector<4x16x8xi1>, vector<4x16x8xf32>
    %cst_44 = arith.constant -9.000000e+15 : f32
    %127 = vector.broadcast %cst_44 : f32 to vector<4x16x8xf32>
    %128 = arith.select %7, %126, %127 : vector<4x16x8xi1>, vector<4x16x8xf32>
    %cst_45 = arith.constant dense<0xFF800000> : vector<4x16xf32>
    %129 = vector.multi_reduction <maximumf>, %128, %cst_45 [2] : vector<4x16x8xf32> to vector<4x16xf32>
    %130 = vector.shape_cast %129 : vector<4x16xf32> to vector<4x16x1xf32>
    %131 = vector.broadcast %130 : vector<4x16x1xf32> to vector<4x16x8xf32>
    %132 = arith.subf %128, %131 : vector<4x16x8xf32>
    %133 = math.exp %132 : vector<4x16x8xf32>
    %cst_46 = arith.constant dense<0.000000e+00> : vector<4x16xf32>
    %134 = vector.multi_reduction <add>, %133, %cst_46 [2] : vector<4x16x8xf32> to vector<4x16xf32>
    %135 = vector.shape_cast %134 : vector<4x16xf32> to vector<4x16x1xf32>
    %136 = tpu.reciprocal %135 {approx = true} : vector<4x16x1xf32> -> vector<4x16x1xf32>
    %137 = vector.broadcast %136 : vector<4x16x1xf32> to vector<4x16x8xf32>
    %138 = arith.mulf %133, %137 : vector<4x16x8xf32>
    "tpu.trace_start"() <{level = 10 : i32, message = "bne,bef->bnf"}> : () -> ()
    %cst_47 = arith.constant dense<0.000000e+00> : vector<4x16x32xf32>
    %139 = tpu.matmul %138, %109, %cst_47 {dimension_numbers = #tpu.dot_dimension_numbers<[2], [1], [1], [2], [0, 0, 0, 1, 1, 2], [0], [0]>} : vector<4x16x8xf32>, vector<4x8x32xf32>, vector<4x16x32xf32> -> vector<4x16x32xf32>
    %cst_48 = arith.constant 0.000000e+00 : f32
    "tpu.trace_stop"() : () -> ()
    %140 = vector.broadcast %cst_48 : f32 to vector<4x16x96xf32>
    %141 = tpu.concatenate %139, %140 in 2 : vector<4x16x32xf32>, vector<4x16x96xf32> -> vector<4x16x128xf32>
    %c0_49 = arith.constant 0 : index
    %c0_50 = arith.constant 0 : index
    %c0_51 = arith.constant 0 : index
    %142 = vector.load %arg8[%c0_49, %c0_50, %c0_51] : memref<4x16x128xf32, #tpu.memory_space<vmem>>, vector<4x16x128xf32>
    tpu.vector_store %arg8[%c0_49, %c0_50, %c0_51], %141 {strides = array<i32>} : memref<4x16x128xf32, #tpu.memory_space<vmem>>, vector<4x16x128xf32>,
    return
  }
  func.func @transform_0(%arg0: i32) -> (i32, i32, i32) {
    %c0_i32 = arith.constant 0 : i32
    %c0_i32_0 = arith.constant 0 : i32
    %c0_i32_1 = arith.constant 0 : i32
    return %arg0, %c0_i32, %c0_i32_0 : i32, i32, i32
  }
  func.func @transform_1(%arg0: i32) -> (i32, i32, i32) {
    %c0_i32 = arith.constant 0 : i32
    %c0_i32_0 = arith.constant 0 : i32
    %c0_i32_1 = arith.constant 0 : i32
    return %arg0, %c0_i32, %c0_i32_0 : i32, i32, i32
  }
  func.func @transform_2(%arg0: i32) -> i32 {
    %c0_i32 = arith.constant 0 : i32
    %c0_i32_0 = arith.constant 0 : i32
    return %c0_i32 : i32
  }
  func.func @transform_3(%arg0: i32) -> (i32, i32) {
    %c0_i32 = arith.constant 0 : i32
    %c0_i32_0 = arith.constant 0 : i32
    %c0_i32_1 = arith.constant 0 : i32
    return %c0_i32, %c0_i32_0 : i32, i32
  }
  func.func @transform_4(%arg0: i32) -> (i32, i32) {
    %c0_i32 = arith.constant 0 : i32
    %c0_i32_0 = arith.constant 0 : i32
    %c0_i32_1 = arith.constant 0 : i32
    return %c0_i32, %c0_i32_0 : i32, i32
  }
  func.func @transform_5(%arg0: i32) -> (i32, i32) {
    %c0_i32 = arith.constant 0 : i32
    %c0_i32_0 = arith.constant 0 : i32
    %c0_i32_1 = arith.constant 0 : i32
    return %c0_i32, %c0_i32_0 : i32, i32
  }
  func.func @transform_6(%arg0: i32) -> (i32, i32) {
    %c0_i32 = arith.constant 0 : i32
    %c0_i32_0 = arith.constant 0 : i32
    %c0_i32_1 = arith.constant 0 : i32
    return %c0_i32, %c0_i32_0 : i32, i32
  }
  func.func @transform_7(%arg0: i32) -> (i32, i32, i32) {
    %c0_i32 = arith.constant 0 : i32
    %c0_i32_0 = arith.constant 0 : i32
    %c0_i32_1 = arith.constant 0 : i32
    return %arg0, %c0_i32, %c0_i32_0 : i32, i32, i32
  }
}

</mosaic_0001>

<bundles_post_ra>
// kernel: tpu_custom_call.1
= control target key start
LH: loop header
LB: loop body
LE: loop exit
PB: predicated region body
PF: predicated region fallthrough
CT: control target
= control target key end

     0   :  { %s5492_s0 = inlined_call_operand.hbm [shape: f32[16,16,32], index: 0, kind: input, shape index: {}]   ;;  %s5493_s1 = inlined_call_operand.hbm [shape: s8[16,8,16], index: 1, kind: input, shape index: {}]   ;;  %s5494_s2 = inlined_call_operand.vmem [shape: f32[2], index: 2, kind: input, shape index: {}]   ;;  %s5495_s3 = inlined_call_operand.vmem [shape: f32[3,32], index: 3, kind: input, shape index: {}]   ;;  %s5496_s4 = inlined_call_operand.hbm [shape: f32[32,32], index: 4, kind: input, shape index: {}]   ;;  %s5497_s5 = inlined_call_operand.vmem [shape: f32[2,32], index: 5, kind: input, shape index: {}]   ;;  %s5498_s6 = inlined_call_operand.vmem [shape: f32[1,32], index: 6, kind: input, shape index: {}]   ;;  %s5499_s7 = inlined_call_operand.hbm [shape: f32[16,16,128], index: 7, kind: output, shape index: {}]  }
   0x1   :  { %5511 = sst [smem:[#allocation18_spill]] %s5492_s0 }
   0x2   :  { %5512 = sst [smem:[#allocation19_spill]] %s5494_s2 }
   0x3   :  { %5513 = sst [smem:[#allocation20_spill]] %s5496_s4 }
   0x4   :  { %12 = vsyncpa [#allocation3], 0 }
   0x5   :  { %14 = vsyncpa [#allocation3 + $0x1], 0 }
   0x6   :  { %15 = vsyncpa [#allocation7], 0 }
   0x7   :  { %17 = vsyncpa [#allocation7 + $0x1], 0 }
   0x8   :  { %18 = vsyncpa [#allocation5], 0 }
   0x9   :  { %19 = vsyncpa [#allocation4], 0 }
   0xa   :  { %21 = vsyncpa [#allocation4 + $0x1], 0  ;;  %s4717_s24 = smov 0   ;;  %s4719_s25 = smov 0  }
   0xb   :  { %s4721_s26 = smov 0   ;;  %s4723_s27 = smov 0  }
   0xc LB: > { %5514 = sst [smem:[#allocation16_spill]] %s4657_s26  ;;  %s4738_s28 = sadd.s32 4294967295, %s4661_s27   ;;  %s4661_s27 = sphi %s4723_s27, %s5547_s27   ;;  %s4657_s26 = sphi %s4721_s26, %s5544_s26   ;;  %s4653_s25 = sphi %s4719_s25, %s5546_s25   ;;  %s4649_s24 = sphi %s4717_s24, %s5545_s24  }
   0xd   : > { %s3792_s29 = sadd.s32 4294967294, %s4661_s27   ;;  %p47_p0 = scmp.ne.s32.totalorder %s4653_s25, %s4649_s24 }
   0xe   : > { %p5500_p1 = scmp.eq.s32.totalorder %s4738_s28, 0  ;;  %p208_p3 = scmp.eq.s32.totalorder %s3792_s29, 3 }
   0xf   : > { %p3793_p5 = scmp.ge.s32.totalorder %s4661_s27, 1  ;;  %p215_p7 = scmp.lt.s32.totalorder %s4661_s27, 5 }
  0x10   : > { %p4747_p4 = por %p5500_p1, %p47_p0  ;;  %p4752_p6 = por %p208_p3, %p47_p0 }
  0x11   : > { %p4757_p8 = pnand %p3793_p5, %p215_p7  ;;  %s4663_s10 = smov [#allocation9]  }
  0x12   : > { %s5515_s30 = scalar_select %p4747_p4, 1, 0 }
  0x13   : > { %s5516_s8 = scalar_select %p4752_p6, 1, 0 }
  0x14   : > { %s5517_s9 = scalar_select %p4757_p8, 1, 0 }
  0x15   : > { %s241_s11 = sshll.u32 %s4663_s10, 4  ;;  %p4301_p9 = pneg %p4757_p8  ;;  %s242_s11 = int_to_ptr.vmem [resolvable:$true] %s241_s11 }
  0x16   : > { %s5518_s2 = sld [smem:[#allocation19_spill]]  ;;  %s5520_s4 = sld [smem:[#allocation20_spill]] }
  0x17   : > { %p4768_p10 = pnand %p4301_p9, %p5500_p1 }
  0x19   : > { %p4482_p12 = pneg %p4768_p10 }
  0x1c   : > { %s228_s14 = sshll.u32 %s5518_s2, 4  ;;  %s4480_s18 = scalar_lea.hbm %s5520_s4, 512  ;;  %s4772_s14 = int_to_ptr.vmem [resolvable:$true] %s228_s14 }
  0x1d   : > { %p4481_p11 = scmp.ne.s32.totalorder %s5520_s4, %s4480_s18  ;;  %p4487_p3 = scmp.lt.u32.totalorder %s4480_s18, %s5520_s4 }
  0x1f   : > { %p4483_p13 = pnand %p4482_p12, %p4481_p11 }
  0x21   : > { %p4484_p0 = pneg %p4483_p13 }
  0x23   : > { %p4489_p5 = pnand %p4487_p3, %p4484_p0 }
  0x25   : > { %4492 = shalt.err (!%p4489_p5)
}
  0x26   : > { %s4493_s23 = scalar_lea.vmem %s242_s11, 512  ;;  %p4501_p2 = scmp.lt.s32.totalorder %s242_s11, %s242_s11 }
  0x27   : > { %p4494_p7 = scmp.ne.s32.totalorder %s242_s11, %s4493_s23  ;;  %p4502_p6 = scmp.lt.s32.totalorder %s4493_s23, %s4493_s23 }
  0x29   : > { %p4496_p9 = pnand %p4494_p7, %p4482_p12  ;;  %p4503_p4 = por %p4502_p6, %p4501_p2 }
  0x2b   : > { %p4497_p1 = pneg %p4496_p9 }
  0x2d   : > { %p4504_p8 = pnand %p4503_p4, %p4497_p1 }
  0x2f   : > { %4507 = shalt.err (!%p4504_p8)
}
  0x30   : > { %s5503_s29 = smov 128   ;;  %s5504_s10 = smov 8  }
  0x31   : > { %4307 = dma.hbm_to_vmem [thread:$0]  (!%p4768_p10), %s5520_s4, 512, %s242_s11, [#allocation7], %s5503_s29, %s5503_s29, %s5504_s10  }
  0x32   : > { %s4508_s16 = scalar_lea.vmem %s4772_s14, 16  ;;  %p4516_p4 = scmp.lt.s32.totalorder %s4772_s14, %s4772_s14 }
  0x33   : > { %p4509_p11 = scmp.ne.s32.totalorder %s4772_s14, %s4508_s16  ;;  %p4517_p6 = scmp.lt.s32.totalorder %s4508_s16, %s4508_s16 }
  0x35   : > { %p4511_p1 = pnand %p4509_p11, %p4482_p12  ;;  %p4518_p8 = por %p4517_p6, %p4516_p4 }
  0x37   : > { %p4512_p2 = pneg %p4511_p1 }
  0x39   : > { %p4519_p13 = pnand %p4518_p8, %p4512_p2 }
  0x3b   : > { %4522 = shalt.err (!%p4519_p13)
}
  0x3c   : > { %s4666_s17 = smov [#allocation8]   ;;  %s4810_s11 = sadd.s32 1, %s4661_s27  }
  0x3d   : > { %4304 = dma.vmem_to_smem (!%p4768_p10), %s4772_s14, 16, %s4666_s17, [#allocation5]  }
  0x3e   : > { %s34_s18 = sadd.s32 1, %s4657_s26  ;;  %s31_s19 = ssub.s32 %s4661_s27, %s4810_s11 }
  0x3f   : > { %p41_p12 = scmp.ne.s32.totalorder %s4657_s26, %s4653_s25  ;;  %p32_p0 = scmp.eq.s32.totalorder %s31_s19, 0 }
  0x40   : > { %p42_p3 = scmp.eq.s32.totalorder %s4661_s27, 0  ;;  %p5521_p5 = scmp.eq.s32.totalorder %s4738_s28, 3 }
  0x41   : > { %p4321_p9 = scmp.lt.s32.totalorder %s4661_s27, 4  ;;  %s4829_s21 = sand.u32 1, %s4657_s26  }
  0x42   : > { %p4820_p7 = por %p5521_p5, %p41_p12  ;;  %p43_p11 = por %p42_p3, %p41_p12 }
  0x43   : > { %s4826_s20 = scalar_select %p32_p0, %s4657_s26, %s34_s18  }
  0x44   : > { %s3797_s14 = sshll.u32 %s4829_s21, 6  ;;  %s3898_s22 = sshll.u32 %s4661_s27, 10 }
  0x45   : > { %5523 = sst [smem:[#allocation17_spill]] %s4826_s20  ;;  %s5524_s0 = sld [smem:[#allocation18_spill]] }
  0x46   : > { %s265_s16 = scalar_lea.vmem [#allocation2], %s3797_s14  ;;  %p4840_p10 = pnand %p4321_p9, %p43_p11 }
  0x47   : > { %s273_s17 = sshll.u32 %s265_s16, 4  ;;  %s3801_s29 = sshll.u32 %s4829_s21, 3  ;;  %s4838_s17 = int_to_ptr.vmem [resolvable:$true] %s273_s17 }
  0x48   : > { %s262_s10 = scalar_lea.sflag [#allocation3], %s4829_s21  ;;  %p4525_p2 = pneg %p4840_p10 }
  0x4b   : > { %s4836_s13 = scalar_lea.hbm %s5524_s0, %s3898_s22  ;;  %s4528_s12 = scalar_lea.hbm %s5524_s0, 4096 }
  0x4c   : > { %s4523_s23 = scalar_lea.hbm %s4836_s13, 1024  ;;  %p4529_p8 = scmp.lt.u32.totalorder %s4836_s13, %s5524_s0 }
  0x4d   : > { %p4524_p1 = scmp.ne.s32.totalorder %s4836_s13, %s4523_s23  ;;  %p4530_p13 = scmp.lt.u32.totalorder %s4528_s12, %s4523_s23 }
  0x4e   : > { %p4532_p0 = scmp.lt.u32.totalorder %s4523_s23, %s4836_s13 }
  0x4f   : > { %p4526_p4 = pnand %p4525_p2, %p4524_p1  ;;  %p4531_p12 = por %p4530_p13, %p4529_p8 }
  0x51   : > { %p4527_p6 = pneg %p4526_p4  ;;  %p4533_p3 = por %p4532_p0, %p4531_p12 }
  0x53   : > { %p4534_p5 = pnand %p4533_p3, %p4527_p6 }
  0x55   : > { %4537 = shalt.err (!%p4534_p5)
}
  0x56   : > { %s4538_s19 = scalar_lea.vmem %s4838_s17, 1024  ;;  %s4667_s14 = smov [#allocation2]  }
  0x57   : > { %p4539_p9 = scmp.ne.s32.totalorder %s4838_s17, %s4538_s19  ;;  %s4543_s22 = sshll.u32 %s4667_s14, 4  ;;  %s4544_s22 = int_to_ptr.vmem [resolvable:$false] %s4543_s22 }
  0x58   : > { %s4545_s2 = scalar_lea.vmem %s4544_s22, 2048  ;;  %p4546_p4 = scmp.lt.s32.totalorder %s4838_s17, %s4544_s22 }
  0x59   : > { %p4541_p11 = pnand %p4539_p9, %p4525_p2  ;;  %p4547_p8 = scmp.lt.s32.totalorder %s4545_s2, %s4538_s19 }
  0x5b   : > { %p4542_p1 = pneg %p4541_p11  ;;  %p4548_p13 = por %p4547_p8, %p4546_p4 }
  0x5d   : > { %p4549_p12 = pnand %p4548_p13, %p4542_p1 }
  0x5f   : > { %4552 = shalt.err (!%p4549_p12)
}
  0x60   : > { %s5526_s23 = smov 8   ;;  %s5527_s12 = smov 128  }
  0x61   : > { %4311 = dma.hbm_to_vmem [thread:$0]  (!%p4840_p10), %s4836_s13, 1024, %s4838_s17, %s262_s10, %s5527_s12, %s5527_s12, %s5526_s23  }
  0x62   : > { %s3899_s16 = sshll.u32 %s4661_s27, 7  ;;  %s287_s2 = scalar_lea.vmem [#allocation6], %s3801_s29 }
  0x63   : > { %s4881_s22 = scalar_lea.hbm %s5493_s1, %s3899_s16  ;;  %s294_s0 = sshll.u32 %s287_s2, 4  ;;  %s4885_s0 = int_to_ptr.vmem [resolvable:$true] %s294_s0 }
  0x64   : > { %s5528_s4 = sand.u32 1, %s4661_s27   ;;  %s4553_s26 = scalar_lea.hbm %s4881_s22, 128 }
  0x65   : > { %s4889_s20 = scalar_lea.sflag [#allocation7], %s5528_s4  ;;  %p4554_p6 = scmp.ne.s32.totalorder %s4881_s22, %s4553_s26 }
  0x66   : > { %s4558_s21 = scalar_lea.hbm %s5493_s1, 512  ;;  %p4559_p5 = scmp.lt.u32.totalorder %s4881_s22, %s5493_s1 }
  0x67   : > { %p4556_p0 = pnand %p4554_p6, %p4525_p2  ;;  %p4560_p9 = scmp.lt.u32.totalorder %s4558_s21, %s4553_s26 }
  0x68   : > { %p4562_p1 = scmp.lt.u32.totalorder %s4553_s26, %s4881_s22 }
  0x69   : > { %p4557_p3 = pneg %p4556_p0  ;;  %p4561_p11 = por %p4560_p9, %p4559_p5 }
  0x6b   : > { %p4563_p4 = por %p4562_p1, %p4561_p11 }
  0x6d   : > { %p4564_p8 = pnand %p4563_p4, %p4557_p3 }
  0x6f   : > { %4567 = shalt.err (!%p4564_p8)
}
  0x70   : > { %s4568_s4 = scalar_lea.vmem %s4885_s0, 128  ;;  %s4668_s29 = smov [#allocation6]  }
  0x71   : > { %p4569_p13 = scmp.ne.s32.totalorder %s4885_s0, %s4568_s4  ;;  %s4573_s12 = sshll.u32 %s4668_s29, 4  ;;  %s4574_s12 = int_to_ptr.vmem [resolvable:$false] %s4573_s12 }
  0x72   : > { %s4575_s16 = scalar_lea.vmem %s4574_s12, 256  ;;  %p4576_p0 = scmp.lt.s32.totalorder %s4885_s0, %s4574_s12 }
  0x73   : > { %p4571_p12 = pnand %p4569_p13, %p4525_p2  ;;  %p4577_p5 = scmp.lt.s32.totalorder %s4575_s16, %s4568_s4 }
  0x75   : > { %p4572_p6 = pneg %p4571_p12  ;;  %p4578_p9 = por %p4577_p5, %p4576_p0 }
  0x77   : > { %p4579_p11 = pnand %p4578_p9, %p4572_p6 }
  0x79   : > { %4582 = shalt.err (!%p4579_p11)
}
  0x7a   : > { %s4669_s26 = smov 32   ;;  %s4670_s14 = smov 2  }
  0x7b   : > { %4314 = dma.hbm_to_vmem [thread:$0]  (!%p4840_p10), %s4881_s22, 128, %s4885_s0, %s4889_s20, %s4669_s26, %s4669_s26, %s4670_s14  }
  0x7c   : > { %p5529_p2 = scmp.ne.s32.totalorder %s5517_s9, 0 }
  0x7d   : > { %s4918_s19 = sand.u32 (!%p5529_p2), 1, %s4653_s25   ;;  %p5530_p3 = scmp.ne.s32.totalorder (!%p5529_p2), %s5515_s30, 0 }
  0x7e   : > { %306 = sbr.rel (%p5529_p2) target bundleno = 3212 (0xc8c), region = 48  ;;  %s3805_s2 = sshll.u32 (!%p5529_p2), %s4918_s19, 6 }
  0x7f   : > { %s309_s10 = scalar_lea.sflag (!%p5529_p2), [#allocation3], %s4918_s19  ;;  %s4924_s13 = scalar_lea.vmem (!%p5529_p2), [#allocation2], %s3805_s2 }
  0x85   : > { %4628 = dma.done.wait (%p5530_p3), %s309_s10, 1024  }
  0x86   : > { %4630 = vsyncadd (%p5530_p3), %s309_s10, 4294966272  ;;  %s317_s0 = sand.u32 1, %s4738_s28   ;;  %s3806_s9 = sshll.u32 %s4918_s19, 3 }
  0x87   : > { %s318_s20 = scalar_lea.sflag [#allocation7], %s317_s0  ;;  %s4932_s18 = scalar_lea.vmem [#allocation6], %s3806_s9 }
  0x88   : > { %4632 = dma.done.wait (%p5530_p3), %s318_s20, 128  }
  0x89   : > { %4634 = vsyncadd (%p5530_p3), %s318_s20, 4294967168  ;;  %p5531_p10 = scmp.eq.s32.totalorder %s4738_s28, 0 }
  0x8b   : > { %4636 = dma.done.wait (%p5531_p10), [#allocation5], 16   ;;  %p5532_p1 = pmov %p5531_p10 }
  0x8d   : > { %4638 = vsyncadd (%p5532_p1), [#allocation5], 4294967280  ;;  %p5533_p4 = pmov %p5532_p1 }
  0x8e   : > { %p5534_p8 = pmov %p5532_p1 }
  0x8f   : > { %4640 = dma.done.wait (%p5533_p4), [#allocation7], 512  }
  0x90   : > { %4642 = vsyncadd (%p5534_p8), [#allocation7], 4294966784 }
  0x91   : > { %334 = sfence }
  0x92   : > { %v4947_v0 = vld [vmem:[%s4924_s13] sm:$0xff]  ;;  %v4950_v1 = vld [vmem:[%s4924_s13 + $0x8] sm:$0xff]  ;;  %vm538_vm0 = vcmask 261120   ;;  %v4953_v2 = vld [vmem:[%s4924_s13 + $0x10] sm:$0xff]  ;;  %v4671_v3 = vmov 0.0|0.0   ;;  %vm4672_vm2 = vmmov 0   ;;  %v863_v16 = vlaneseq }
  0x93   : > { %4222 = vmatprep.subr.bf16.mxu0 %v4671_v3  ;;  %v4223_v4 = vpack.c.bf16 %v4950_v1, %v4947_v0  ;;  %vm4960_vm1 = vmpackc.low %vm538_vm0, %vm538_vm0  ;;  %4226 = vmatprep.subr.bf16.mxu1 %v4671_v3  ;;  %v4966_v6 = vld [vmem:[%s4924_s13 + $0x18] sm:$0xff]  ;;  %v4673_v8 = vmov 0.0   ;;  %v4980_v9 = vld [vmem:[%s4924_s13 + $0x20] sm:$0xff]  ;;  %s536_s21 = sld [smem:[#allocation8]]  ;;  %vm883_vm6 = vcmask 130048   ;;  %vm1607_vm15 = vcmask 64512  }
  0x94   : > { %v4227_v7 = vpack.c.bf16 %v4966_v6, %v4953_v2  ;;  %4014 = vmatprep.mubr.msk.f32.mxu0 %vm4672_vm2, %v4673_v8  ;;  %4021 = vmatprep.mubr.msk.f32.mxu1 %vm4672_vm2, %v4673_v8  ;;  %v4983_v10 = vld [vmem:[%s4924_s13 + $0x28] sm:$0xff]  ;;  %v4987_v11 = vld [vmem:[%s4924_s13 + $0x30] sm:$0xff]  ;;  %v4990_v12 = vld [vmem:[%s4924_s13 + $0x38] sm:$0xff]  ;;  %v5032_v19 = vshrl.u32 %v863_v16, 7  ;;  %s3810_s4 = sld [smem:[#allocation8 + $0x1]]  ;;  %s365_s16 = scalar_lea.vmem [#allocation10], %s3805_s2 }
  0x95   : > { %4225 = vmatpush3.bf16.xpose.msk.msra.mxu0 %vm4960_vm1, %v4223_v4  ;;  %v4995_v13 = vld [vmem:[%s5495_s3] sm:$0x7]  ;;  %v4999_v14 = vpack.c.bf16 %v4983_v10, %v4980_v9  ;;  %v5003_v15 = vpack.c.bf16 %v4990_v12, %v4987_v11  ;;  %s3901_s26 = sshll.u32 %s4738_s28, 10  ;;  %s3675_s14 = sshll.u32 %s365_s16, 4  ;;  %s5446_s14 = int_to_ptr.vmem [resolvable:$true] %s3675_s14 }
  0x96   : > { %4229 = vmatpush3.bf16.xpose.msk.msra.mxu1 %vm4960_vm1, %v4227_v7  ;;  %4230 = vmatprep.subr.bf16.mxu0 %v4671_v3  ;;  %v3903_v17 = vld [vmem:[%s4932_s18] sm:$0xff]   ;;  %v5037_v27 = vsub.s32 0, %v5032_v19  ;;  %s5444_s13 = scalar_lea.hbm %s5499_s7, %s3901_s26  ;;  %s3661_s28 = scalar_lea.sflag [#allocation4], %s4918_s19 }
  0x97   : > { %4234 = vmatprep.subr.bf16.mxu1 %v4671_v3  ;;  %v3904_v18 = vunpack.c.0.s8 %v3903_v17  ;;  %v3905_v21 = vunpack.c.1.s8 %v3903_v17  ;;  %v3908_v34 = vunpack.c.2.s8 %v3903_v17  ;;  %v3909_v37 = vunpack.c.3.s8 %v3903_v17  ;;  %s4583_s0 = scalar_lea.vmem %s5446_s14, 1024  ;;  %s4674_s9 = smov [#allocation10]  }
  0x98   : > { %p4584_p13 = scmp.ne.s32.totalorder %s5446_s14, %s4583_s0  ;;  %s4587_s20 = sshll.u32 %s4674_s9, 4  ;;  %s4588_s20 = int_to_ptr.vmem [resolvable:$false] %s4587_s20 }
  0x99   : > { %v846_v20 = vstv %s536_s21  ;;  %v5034_v26 = vcvt.s32.f32 %v3904_v18  ;;  %v5039_v30 = vcvt.s32.f32 %v3905_v21  ;;  %v5050_v46 = vcvt.s32.f32 %v3908_v34  ;;  %s4589_s18 = scalar_lea.vmem %s4588_s20, 2048  ;;  %p4590_p0 = scmp.lt.s32.totalorder %s5446_s14, %s4588_s20 }
  0x9a   : > { %v5052_v49 = vcvt.s32.f32 %v3909_v37  ;;  %p4585_p12 = pnand %p4584_p13, %p4820_p7  ;;  %p4591_p5 = scmp.lt.s32.totalorder %s4589_s18, %s4583_s0 }
  0x9b   : > { %vm389_vm5 = vcmp.gt.f32.partialorder %v5034_v26, 0.0  ;;  %vm390_vm7 = vcmp.gt.f32.partialorder %v5039_v30, 0.0  ;;  %vm391_vm10 = vcmp.gt.f32.partialorder %v5050_v46, 0.0 }
  0x9c   : > { %4015 = vmatmul.mubr.msk.f32.vlgmr.msra.gmra.mrb[0].mxu0 %vm538_vm0, %v4995_v13  ;;  %vm5509_vm11 = vcmp.gt.f32.partialorder %v5052_v49, 0.0  ;;  %p4586_p6 = pneg %p4585_p12  ;;  %p4592_p9 = por %p4591_p5, %p4590_p0 }
  0x9d   : > { %4233 = vmatpush3.bf16.xpose.msk.msra.mxu0 %vm4960_vm1, %v4999_v14  ;;  %4022 = vmatmul.mubr.msk.f32.vlgmr.msra.gmra.mrb[0].mxu1 %vm538_vm0, %v4995_v13 }
  0x9e   : > { %4237 = vmatpush3.bf16.xpose.msk.msra.mxu1 %vm4960_vm1, %v5003_v15  ;;  %4028 = vmatprep.mubr.msk.f32.mxu0 %vm4672_vm2, %v4673_v8  ;;  %p4593_p11 = pnand %p4592_p9, %p4586_p6 }
  0x9f   : > { %4035 = vmatprep.mubr.msk.f32.mxu1 %vm4672_vm2, %v4673_v8  ;;  %4238 = vmatprep.subr.bf16.mxu0 %v4671_v3 }
  0xa0   : > { %4241 = vmatprep.subr.bf16.mxu1 %v4671_v3 }
  0xa4   : > { %4029 = vmatmul.mubr.msk.f32.vlgmr.msra.gmra.mrb[2].mxu0 %vm538_vm0, %v4995_v13 }
  0xa5   : > { %4036 = vmatmul.mubr.msk.f32.vlgmr.msra.gmra.mrb[2].mxu1 %vm538_vm0, %v4995_v13  ;;  %4240 = vmatpush3.bf16.msra.mxu0 %v4223_v4 }
  0xa6   : > { %4042 = vmatprep.mubr.msk.f32.mxu0 %vm4672_vm2, %v4673_v8  ;;  %4243 = vmatpush3.bf16.msra.mxu1 %v4227_v7 }
  0xa7   : > { %4049 = vmatprep.mubr.msk.f32.mxu1 %vm4672_vm2, %v4673_v8  ;;  %4244 = vmatprep.subr.bf16.mxu0 %v4671_v3 }
  0xa8   : > { %4247 = vmatprep.subr.bf16.mxu1 %v4671_v3 }
 0x16f   : > { %v614_v22 = vpop.f32.mrb[0].mxu0 }
 0x170   : > { %v847_v23 = vadd.f32 %v846_v20, %v614_v22  ;;  %v4016_v24 = vpop.f32.mrb[1].mxu0  ;;  %v690_v25 = vpop.f32.mrb[0].mxu1 }
 0x171   : > { %v848_v28 = vadd.f32 %v846_v20, %v690_v25  ;;  %v4023_v29 = vpop.f32.mrb[1].mxu1 }
 0x172   : > { %vm851_vm3 = vcmp.gt.f32.partialorder %v847_v23, 0.0  ;;  %v855_v31 = vmul.f32 0.1, %v847_v23 }
 0x173   : > { %vm852_vm4 = vcmp.gt.f32.partialorder %v848_v28, 0.0  ;;  %v856_v32 = vmul.f32 0.1, %v848_v28 }
 0x174   : > { %v859_v33 = vsel %vm851_vm3, %v847_v23, %v855_v31 }
 0x175   : > { %v866_v35 = vrot.slane %v859_v33, %v5037_v27  ;;  %v860_v36 = vsel %vm852_vm4, %v848_v28, %v856_v32 }
 0x176   : > { %v870_v38 = vrot.slane %v860_v36, %v5037_v27 }
 0x177   : > { %v766_v39 = vpop.f32.mrb[2].mxu0  ;;  %v879_v40 = vsel %vm389_vm5, %v866_v35, -9e+15 }
 0x178   : > { %v849_v41 = vadd.f32 %v846_v20, %v766_v39  ;;  %v884_v42 = vsel %vm883_vm6, %v879_v40, -inf  ;;  %v4030_v43 = vpop.f32.mrb[3].mxu0  ;;  %v842_v44 = vpop.f32.mrb[2].mxu1  ;;  %v880_v45 = vsel %vm390_vm7, %v870_v38, -9e+15 }
 0x179   : > { %885 = vmax.xlane.f32.xlu0 %v884_v42  ;;  %v850_v47 = vadd.f32 %v846_v20, %v842_v44  ;;  %v4037_v48 = vpop.f32.mrb[3].mxu1  ;;  %v887_v51 = vsel %vm883_vm6, %v880_v45, -inf }
 0x17a   : > { %vm853_vm8 = vcmp.gt.f32.partialorder %v849_v41, 0.0  ;;  %v857_v50 = vmul.f32 0.1, %v849_v41 }
 0x17b   : > { %vm854_vm9 = vcmp.gt.f32.partialorder %v850_v47, 0.0  ;;  %v858_v52 = vmul.f32 0.1, %v850_v47 }
 0x17c   : > { %v861_v53 = vsel %vm853_vm8, %v849_v41, %v857_v50 }
 0x17d   : > { %888 = vmax.xlane.f32.xlu0 %v887_v51  ;;  %v874_v54 = vrot.slane %v861_v53, %v5037_v27  ;;  %v862_v55 = vsel %vm854_vm9, %v850_v47, %v858_v52 }
 0x17e   : > { %v878_v56 = vrot.slane %v862_v55, %v5037_v27 }
 0x17f   : > { %v881_v57 = vsel %vm391_vm10, %v874_v54, -9e+15 }
 0x180   : > { %v890_v58 = vsel %vm883_vm6, %v881_v57, -inf  ;;  %v882_v59 = vsel %vm5509_vm11, %v878_v56, -9e+15 }
 0x181   : > { %891 = vmax.xlane.f32.xlu1 %v890_v58  ;;  %v893_v60 = vsel %vm883_vm6, %v882_v59, -inf }
 0x185   : > { %894 = vmax.xlane.f32.xlu1 %v893_v60 }
 0x206   : > { %v886_v61 = vpop.xlane.xlu0 %885 }
 0x207   : > { %v896_v62 = vsub.f32 %v879_v40, %v886_v61 }
 0x209   : > { %v900_v63 = vmul.f32 1.442695, %v896_v62 }
 0x20a   : > { %v889_v4 = vpop.xlane.xlu0 %888 }
 0x20b   : > { %4368 = vpow2.f32 %v900_v63  ;;  %v897_v7 = vsub.f32 %v880_v45, %v889_v4 }
 0x20d   : > { %v902_v16 = vmul.f32 1.442695, %v897_v7 }
 0x20e   : > { %v892_v17 = vpop.xlane.xlu1 %891 }
 0x20f   : > { %4370 = vpow2.f32 %v902_v16  ;;  %v898_v18 = vsub.f32 %v881_v57, %v892_v17 }
 0x211   : > { %v904_v20 = vmul.f32 1.442695, %v898_v18 }
 0x212   : > { %v895_v21 = vpop.xlane.xlu1 %894 }
 0x213   : > { %4372 = vpow2.f32 %v904_v20  ;;  %v899_v22 = vsub.f32 %v882_v59, %v895_v21 }
 0x215   : > { %v4369_v23 = vpop.eup %4368  ;;  %v906_v24 = vmul.f32 1.442695, %v899_v22 }
 0x216   : > { %v908_v25 = vsel %vm883_vm6, %v4369_v23, 0.0 }
 0x217   : > { %4374 = vpow2.f32 %v906_v24  ;;  %909 = vadd.xlane.f32.xlu0 %v908_v25 }
 0x219   : > { %v4371_v28 = vpop.eup %4370 }
 0x21a   : > { %v911_v29 = vsel %vm883_vm6, %v4371_v28, 0.0 }
 0x21b   : > { %912 = vadd.xlane.f32.xlu1 %v911_v29 }
 0x21d   : > { %v4373_v31 = vpop.eup %4372 }
 0x21e   : > { %v914_v32 = vsel %vm883_vm6, %v4373_v31, 0.0 }
 0x21f   : > { %915 = vadd.xlane.f32.xlu0 %v914_v32 }
 0x221   : > { %v4375_v33 = vpop.eup %4374 }
 0x222   : > { %v917_v34 = vsel %vm883_vm6, %v4375_v33, 0.0 }
 0x223   : > { %918 = vadd.xlane.f32.xlu1 %v917_v34 }
 0x2a4   : > { %v910_v35 = vpop.xlane.xlu0 %909 }
 0x2a5   : > { %4376 = vrcp.f32 %v910_v35 }
 0x2a8   : > { %v913_v36 = vpop.xlane.xlu1 %912 }
 0x2a9   : > { %4378 = vrcp.f32 %v913_v36 }
 0x2ac   : > { %v916_v37 = vpop.xlane.xlu0 %915 }
 0x2ad   : > { %4380 = vrcp.f32 %v916_v37 }
 0x2af   : > { %v4377_v38 = vpop.eup %4376 }
 0x2b0   : > { %v924_v39 = vmul.f32 %v4377_v38, %v4369_v23  ;;  %v919_v40 = vpop.xlane.xlu1 %918 }
 0x2b1   : > { %4382 = vrcp.f32 %v919_v40 }
 0x2b2   : > { %4043 = vmatmul.mubr.msk.f32.vlgmr.msra.gmra.mrb[4].mxu0 %vm883_vm6, %v924_v39 }
 0x2b3   : > { %v4379_v41 = vpop.eup %4378  ;;  %4246 = vmatpush3.bf16.msra.mxu0 %v4999_v14  ;;  %4056 = vmatprep.mubr.msk.f32.mxu0 %vm4672_vm2, %v4673_v8 }
 0x2b4   : > { %v925_v42 = vmul.f32 %v4379_v41, %v4371_v28  ;;  %4066 = vmatprep.subr.mxu0 %v4673_v8 }
 0x2b6   : > { %4050 = vmatmul.mubr.msk.f32.vlgmr.msra.gmra.mrb[4].mxu1 %vm883_vm6, %v925_v42 }
 0x2b7   : > { %v4381_v43 = vpop.eup %4380  ;;  %4249 = vmatpush3.bf16.msra.mxu1 %v5003_v15  ;;  %4063 = vmatprep.mubr.msk.f32.mxu1 %vm4672_vm2, %v4673_v8  ;;  %v1222_v15 = vsub.s32 1, %v5032_v19 }
 0x2b8   : > { %v926_v44 = vmul.f32 %v4381_v43, %v4373_v31  ;;  %4071 = vmatprep.subr.mxu1 %v4673_v8 }
 0x2b9   : > { %v1223_v47 = vrot.slane %v4995_v13, %v1222_v15 }
 0x2ba   : > { %4057 = vmatmul.mubr.msk.f32.vlgmr.msra.gmra.mrb[6].mxu0 %vm883_vm6, %v926_v44 }
 0x2bb   : > { %v4383_v14 = vpop.eup %4382  ;;  %4068 = vmatprep.mubr.msk.f32.mxu0 %vm4672_vm2, %v4673_v8  ;;  %v1224_v48 = vmul.f32 %v1223_v47, %v4947_v0  ;;  %v1225_v50 = vmul.f32 %v1223_v47, %v4950_v1  ;;  %v1226_v51 = vmul.f32 %v1223_v47, %v4953_v2  ;;  %v1227_v52 = vmul.f32 %v1223_v47, %v4966_v6 }
 0x2bc   : > { %v927_v45 = vmul.f32 %v4383_v14, %v4375_v33  ;;  %v1228_v57 = vmul.f32 %v1223_v47, %v4980_v9  ;;  %v1230_v0 = vmul.f32 %v1223_v47, %v4987_v11  ;;  %v1229_v6 = vmul.f32 %v1223_v47, %v4983_v10 }
 0x2bd   : > { %v1232_v53 = vsel %vm538_vm0, %v1224_v48, 0.0  ;;  %v1235_v54 = vsel %vm538_vm0, %v1225_v50, 0.0  ;;  %v1238_v55 = vsel %vm538_vm0, %v1226_v51, 0.0  ;;  %v1241_v56 = vsel %vm538_vm0, %v1227_v52, 0.0 }
 0x2be   : > { %4064 = vmatmul.mubr.msk.f32.vlgmr.msra.gmra.mrb[6].mxu1 %vm883_vm6, %v927_v45  ;;  %1233 = vadd.xlane.f32.xlu0 %v1232_v53  ;;  %v1244_v1 = vsel %vm538_vm0, %v1228_v57, 0.0  ;;  %v1250_v2 = vsel %vm538_vm0, %v1230_v0, 0.0  ;;  %v1231_v58 = vmul.f32 %v1223_v47, %v4990_v12  ;;  %v1247_v59 = vsel %vm538_vm0, %v1229_v6, 0.0 }
 0x2bf   : > { %4073 = vmatprep.mubr.msk.f32.mxu1 %vm4672_vm2, %v4673_v8  ;;  %1236 = vadd.xlane.f32.xlu1 %v1235_v54  ;;  %v1256_v10 = vrot.slane %v4995_v13, 2 }
 0x2c0   : > { %v1253_v60 = vsel %vm538_vm0, %v1231_v58, 0.0 }
 0x2c2   : > { %1239 = vadd.xlane.f32.xlu0 %v1238_v55 }
 0x2c3   : > { %1242 = vadd.xlane.f32.xlu1 %v1241_v56 }
 0x2c6   : > { %1245 = vadd.xlane.f32.xlu0 %v1244_v1 }
 0x2c7   : > { %1251 = vadd.xlane.f32.xlu1 %v1250_v2 }
 0x2ca   : > { %1248 = vadd.xlane.f32.xlu0 %v1247_v59 }
 0x2cb   : > { %1254 = vadd.xlane.f32.xlu1 %v1253_v60 }
 0x2f7   : > { %393 = vxpose.xlu0.b32.start.end [1/1] (short) (narrow) %v5034_v26, 16 }
 0x2fc   : > { %457 = vxpose.xlu0.b32.start.end [1/1] (short) (narrow) %v5050_v46, 16 }
 0x2fe   : > { %425 = vxpose.xlu1.b32.start.end [1/1] (short) (narrow) %v5039_v30, 16 }
 0x301   : > { %489 = vxpose.xlu0.b32.start.end [1/1] (short) (narrow) %v5052_v49, 16 }
 0x34b   : > { %v1234_v7 = vpop.xlane.xlu0 %1233 }
 0x34c   : > { %v1237_v18 = vpop.xlane.xlu1 %1236 }
 0x34f   : > { %v1240_v16 = vpop.xlane.xlu0 %1239 }
 0x350   : > { %v1243_v22 = vpop.xlane.xlu1 %1242 }
 0x353   : > { %v1246_v17 = vpop.xlane.xlu0 %1245 }
 0x354   : > { %v1252_v24 = vpop.xlane.xlu1 %1251 }
 0x357   : > { %v1249_v20 = vpop.xlane.xlu0 %1248 }
 0x358   : > { %v1255_v28 = vpop.xlane.xlu1 %1254 }
 0x377   : > { %v5132_v21 = vpop.trf.xlu0 }
 0x378   : > { %vm5508_vm3 = vcmp.gt.f32.partialorder %v5132_v21, 0.0 }
 0x37b   : > { %v5134_v23 = vpop.trf.xlu0 }
 0x37c   : > { %vm5506_vm12 = vcmp.gt.f32.partialorder %v5134_v23, 0.0 }
 0x37e   : > { %v5139_v35 = vpop.trf.xlu1 }
 0x37f   : > { %v5136_v25 = vpop.trf.xlu0  ;;  %vm5507_vm4 = vcmp.gt.f32.partialorder %v5139_v35, 0.0 }
 0x382   : > { %v5152_v50 = vpop.trf.xlu1 }
 0x383   : > { %v5142_v37 = vpop.trf.xlu0 }
 0x385   : > { %v997_v9 = vpop.f32.mrb[4].mxu0 }
 0x386   : > { %v4044_v11 = vpop.f32.mrb[5].mxu0  ;;  %4067 = vmatpush3.xpose.msk.msra.mxu0 %vm538_vm0, %v997_v9 }
 0x387   : > { %4076 = vmatprep.subr.mxu0 %v4673_v8  ;;  %v5159_v55 = vpop.trf.xlu0 }
 0x389   : > { %v1070_v12 = vpop.f32.mrb[4].mxu1  ;;  %4069 = vmatmul.mubr.msk.f32.vlgmr.msra.gmra.mrb[8].mxu0 %vm538_vm0, %v1256_v10 }
 0x38a   : > { %v4051_v61 = vpop.f32.mrb[5].mxu1  ;;  %4072 = vmatpush3.xpose.msk.msra.mxu1 %vm538_vm0, %v1070_v12  ;;  %4078 = vmatprep.mubr.msk.f32.mxu0 %vm4672_vm2, %v4673_v8 }
 0x38b   : > { %4081 = vmatprep.subr.mxu1 %v4673_v8 }
 0x38d   : > { %v5117_v62 = vpop.f32.mrb[6].mxu0  ;;  %4074 = vmatmul.mubr.msk.f32.vlgmr.msra.gmra.mrb[8].mxu1 %vm538_vm0, %v1256_v10 }
 0x38e   : > { %v4058_v13 = vpop.f32.mrb[7].mxu0  ;;  %4077 = vmatpush3.xpose.msk.msra.mxu0 %vm538_vm0, %v5117_v62  ;;  %4083 = vmatprep.mubr.msk.f32.mxu1 %vm4672_vm2, %v4673_v8 }
 0x38f   : > { %4086 = vmatprep.subr.mxu0 %v997_v9 }
 0x391   : > { %v5124_v63 = vpop.f32.mrb[6].mxu1  ;;  %4079 = vmatmul.mubr.msk.f32.vlgmr.msra.gmra.mrb[10].mxu0 %vm538_vm0, %v1256_v10 }
 0x392   : > { %v4065_v4 = vpop.f32.mrb[7].mxu1  ;;  %4082 = vmatpush3.xpose.msk.msra.mxu1 %vm538_vm0, %v5124_v63  ;;  %4087 = vmatpush3.msra.mxu0 %v997_v9 }
 0x393   : > { %4091 = vmatprep.subr.mxu1 %v1070_v12  ;;  %4096 = vmatprep.subr.mxu0 %v5117_v62  ;;  %v5169_v4 = vpop.trf.xlu0 }
 0x394   : > { %vm528_vm11 = vcmp.gt.f32.partialorder %v5169_v4, 0.0 }
 0x395   : > { %4084 = vmatmul.mubr.msk.f32.vlgmr.msra.gmra.mrb[10].mxu1 %vm538_vm0, %v1256_v10 }
 0x396   : > { %4092 = vmatpush3.msra.mxu1 %v1070_v12 }
 0x397   : > { %4101 = vmatprep.subr.mxu1 %v5124_v63 }
 0x45c   : > { %v1328_v29 = vpop.f32.mrb[8].mxu0 }
 0x45d   : > { %v1554_v31 = vrot.slane %v1328_v29, %v5037_v27  ;;  %v4070_v32 = vpop.f32.mrb[9].mxu0 }
 0x45f   : > { %v1567_v33 = vadd.f32 %v1554_v31, %v1234_v7  ;;  %v1568_v34 = vadd.f32 %v1554_v31, %v1237_v18 }
 0x460   : > { %v1401_v36 = vpop.f32.mrb[8].mxu1 }
 0x461   : > { %v1558_v38 = vrot.slane %v1401_v36, %v5037_v27  ;;  %v4075_v39 = vpop.f32.mrb[9].mxu1  ;;  %vm1576_vm13 = vcmp.gt.f32.partialorder %v1568_v34, 0.0  ;;  %v1584_v40 = vmul.f32 0.1, %v1568_v34  ;;  %vm1575_vm14 = vcmp.gt.f32.partialorder %v1567_v33, 0.0 }
 0x462   : > { %v1583_v41 = vmul.f32 0.1, %v1567_v33 }
 0x463   : > { %v1569_v42 = vadd.f32 %v1558_v38, %v1240_v16  ;;  %v1570_v43 = vadd.f32 %v1558_v38, %v1243_v22  ;;  %v1592_v44 = vsel %vm1576_vm13, %v1568_v34, %v1584_v40  ;;  %vm5510_vm13 = vcmp.gt.f32.partialorder %v5152_v50, 0.0 }
 0x464   : > { %v1474_v14 = vpop.f32.mrb[10].mxu0  ;;  %v5149_v45 = vsel %vm5506_vm12, %v1592_v44, -9e+15  ;;  %v1591_v47 = vsel %vm1575_vm14, %v1567_v33, %v1583_v41  ;;  %vm527_vm12 = vcmp.gt.f32.partialorder %v5159_v55, 0.0 }
 0x465   : > { %v1562_v48 = vrot.slane %v1474_v14, %v5037_v27  ;;  %v1611_v51 = vsel %vm1607_vm15, %v5149_v45, -inf  ;;  %v1599_v52 = vsel %vm5508_vm3, %v1591_v47, -9e+15  ;;  %v4080_v53 = vpop.f32.mrb[11].mxu0  ;;  %vm1577_vm8 = vcmp.gt.f32.partialorder %v1569_v42, 0.0 }
 0x466   : > { %1612 = vmax.xlane.f32.xlu0 %v1611_v51  ;;  %v1608_v54 = vsel %vm1607_vm15, %v1599_v52, -inf  ;;  %v1585_v56 = vmul.f32 0.1, %v1569_v42  ;;  %vm1578_vm9 = vcmp.gt.f32.partialorder %v1570_v43, 0.0  ;;  %v1586_v57 = vmul.f32 0.1, %v1570_v43 }
 0x467   : > { %v1571_v0 = vadd.f32 %v1562_v48, %v1246_v17  ;;  %1609 = vmax.xlane.f32.xlu1 %v1608_v54  ;;  %v1572_v1 = vadd.f32 %v1562_v48, %v1249_v20  ;;  %vm525_vm3 = vcmp.gt.f32.partialorder %v5136_v25, 0.0 }
 0x468   : > { %v1547_v2 = vpop.f32.mrb[10].mxu1  ;;  %v1593_v6 = vsel %vm1577_vm8, %v1569_v42, %v1585_v56  ;;  %v1594_v58 = vsel %vm1578_vm9, %v1570_v43, %v1586_v57 }
 0x469   : > { %v1566_v59 = vrot.slane %v1547_v2, %v5037_v27  ;;  %v1601_v60 = vsel %vm5507_vm4, %v1593_v6, -9e+15  ;;  %v4085_v9 = vpop.f32.mrb[11].mxu1  ;;  %vm1579_vm14 = vcmp.gt.f32.partialorder %v1571_v0, 0.0  ;;  %v1587_v11 = vmul.f32 0.1, %v1571_v0 }
 0x46a   : > { %v1614_v10 = vsel %vm1607_vm15, %v1601_v60, -inf  ;;  %v1602_v13 = vsel %vm5510_vm13, %v1594_v58, -9e+15  ;;  %v1588_v16 = vmul.f32 0.1, %v1572_v1  ;;  %vm1580_vm4 = vcmp.gt.f32.partialorder %v1572_v1, 0.0 }
 0x46b   : > { %v1573_v12 = vadd.f32 %v1566_v59, %v1252_v24  ;;  %v1574_v61 = vadd.f32 %v1566_v59, %v1255_v28  ;;  %1615 = vmax.xlane.f32.xlu1 %v1614_v10  ;;  %v1595_v7 = vsel %vm1579_vm14, %v1571_v0, %v1587_v11  ;;  %v1617_v18 = vsel %vm1607_vm15, %v1602_v13, -inf }
 0x46c   : > { %v1603_v24 = vsel %vm525_vm3, %v1595_v7, -9e+15  ;;  %vm526_vm13 = vcmp.gt.f32.partialorder %v5142_v37, 0.0  ;;  %v1596_v31 = vsel %vm1580_vm4, %v1572_v1, %v1588_v16 }
 0x46d   : > { %vm1581_vm8 = vcmp.gt.f32.partialorder %v1573_v12, 0.0  ;;  %v1589_v17 = vmul.f32 0.1, %v1573_v12  ;;  %vm1582_vm9 = vcmp.gt.f32.partialorder %v1574_v61, 0.0  ;;  %v1590_v20 = vmul.f32 0.1, %v1574_v61 }
 0x46e   : > { %v1620_v33 = vsel %vm1607_vm15, %v1603_v24, -inf  ;;  %v1604_v36 = vsel %vm526_vm13, %v1596_v31, -9e+15 }
 0x46f   : > { %1618 = vmax.xlane.f32.xlu1 %v1617_v18  ;;  %v1597_v22 = vsel %vm1581_vm8, %v1573_v12, %v1589_v17  ;;  %v1598_v29 = vsel %vm1582_vm9, %v1574_v61, %v1590_v20  ;;  %v1623_v39 = vsel %vm1607_vm15, %v1604_v36, -inf }
 0x470   : > { %v1605_v28 = vsel %vm527_vm12, %v1597_v22, -9e+15  ;;  %v1606_v34 = vsel %vm528_vm11, %v1598_v29, -9e+15 }
 0x471   : > { %v1626_v32 = vsel %vm1607_vm15, %v1605_v28, -inf  ;;  %v1629_v38 = vsel %vm1607_vm15, %v1606_v34, -inf }
 0x472   : > { %1627 = vmax.xlane.f32.xlu0 %v1626_v32 }
 0x473   : > { %1621 = vmax.xlane.f32.xlu1 %v1620_v33 }
 0x476   : > { %1630 = vmax.xlane.f32.xlu0 %v1629_v38 }
 0x477   : > { %1624 = vmax.xlane.f32.xlu1 %v1623_v39 }
 0x4f3   : > { %v1613_v40 = vpop.xlane.xlu0 %1612 }
 0x4f4   : > { %v1633_v41 = vsub.f32 %v5149_v45, %v1613_v40  ;;  %v1610_v42 = vpop.xlane.xlu1 %1609 }
 0x4f5   : > { %v1632_v43 = vsub.f32 %v1599_v52, %v1610_v42 }
 0x4f6   : > { %v1642_v44 = vmul.f32 1.442695, %v1633_v41 }
 0x4f7   : > { %v1640_v14 = vmul.f32 1.442695, %v1632_v43 }
 0x4f8   : > { %4384 = vpow2.f32 %v1642_v44  ;;  %v1616_v47 = vpop.xlane.xlu1 %1615 }
 0x4f9   : > { %4386 = vpow2.f32 %v1640_v14  ;;  %v1634_v48 = vsub.f32 %v1601_v60, %v1616_v47 }
 0x4fb   : > { %v1644_v51 = vmul.f32 1.442695, %v1634_v48 }
 0x4fc   : > { %v1619_v53 = vpop.xlane.xlu1 %1618 }
 0x4fd   : > { %4388 = vpow2.f32 %v1644_v51  ;;  %v1635_v54 = vsub.f32 %v1602_v13, %v1619_v53 }
 0x4ff   : > { %v1646_v56 = vmul.f32 1.442695, %v1635_v54  ;;  %v1628_v57 = vpop.xlane.xlu0 %1627 }
 0x500   : > { %v1638_v0 = vsub.f32 %v1605_v28, %v1628_v57  ;;  %v1622_v1 = vpop.xlane.xlu1 %1621 }
 0x501   : > { %4390 = vpow2.f32 %v1646_v56  ;;  %v1636_v2 = vsub.f32 %v1603_v24, %v1622_v1 }
 0x502   : > { %v4385_v6 = vpop.eup %4384  ;;  %v1652_v45 = vmul.f32 1.442695, %v1638_v0 }
 0x503   : > { %v4387_v58 = vpop.eup %4386  ;;  %v1648_v52 = vmul.f32 1.442695, %v1636_v2  ;;  %v1631_v59 = vpop.xlane.xlu0 %1630  ;;  %v1659_v9 = vsel %vm1607_vm15, %v4385_v6, 0.0 }
 0x504   : > { %4392 = vpow2.f32 %v1652_v45  ;;  %v1639_v10 = vsub.f32 %v1606_v34, %v1631_v59  ;;  %v1625_v60 = vpop.xlane.xlu1 %1624  ;;  %1660 = vadd.xlane.f32.xlu0 %v1659_v9  ;;  %v1656_v11 = vsel %vm1607_vm15, %v4387_v58, 0.0  ;;  %v534_v9 = vld [vmem:[#allocation9 + $0x10] sm:$0xff] }
 0x505   : > { %4394 = vpow2.f32 %v1648_v52  ;;  %v1637_v12 = vsub.f32 %v1604_v36, %v1625_v60  ;;  %1657 = vadd.xlane.f32.xlu1 %v1656_v11  ;;  %v533_v52 = vld [vmem:[#allocation9 + $0x8] sm:$0xff] }
 0x506   : > { %v1654_v61 = vmul.f32 1.442695, %v1639_v10  ;;  %v535_v10 = vld [vmem:[#allocation9 + $0x18] sm:$0xff] }
 0x507   : > { %v4389_v13 = vpop.eup %4388  ;;  %v1650_v7 = vmul.f32 1.442695, %v1637_v12  ;;  %v4254_v60 = vpack.c.bf16 %v535_v10, %v534_v9 }
 0x508   : > { %4396 = vpow2.f32 %v1654_v61  ;;  %v1662_v16 = vsel %vm1607_vm15, %v4389_v13, 0.0 }
 0x509   : > { %4398 = vpow2.f32 %v1650_v7  ;;  %1663 = vadd.xlane.f32.xlu1 %v1662_v16 }
 0x50b   : > { %v4391_v17 = vpop.eup %4390 }
 0x50c   : > { %v1665_v18 = vsel %vm1607_vm15, %v4391_v17, 0.0 }
 0x50d   : > { %1666 = vadd.xlane.f32.xlu0 %v1665_v18 }
 0x50e   : > { %v4393_v20 = vpop.eup %4392 }
 0x50f   : > { %v4395_v22 = vpop.eup %4394  ;;  %v1674_v24 = vsel %vm1607_vm15, %v4393_v20, 0.0 }
 0x510   : > { %v1668_v28 = vsel %vm1607_vm15, %v4395_v22, 0.0 }
 0x511   : > { %1675 = vadd.xlane.f32.xlu0 %v1674_v24  ;;  %1669 = vadd.xlane.f32.xlu1 %v1668_v28 }
 0x512   : > { %v4397_v29 = vpop.eup %4396 }
 0x513   : > { %v4399_v31 = vpop.eup %4398  ;;  %v1677_v32 = vsel %vm1607_vm15, %v4397_v29, 0.0 }
 0x514   : > { %v1671_v33 = vsel %vm1607_vm15, %v4399_v31, 0.0 }
 0x515   : > { %1678 = vadd.xlane.f32.xlu0 %v1677_v32  ;;  %1672 = vadd.xlane.f32.xlu1 %v1671_v33 }
 0x591   : > { %v1661_v34 = vpop.xlane.xlu0 %1660 }
 0x592   : > { %4400 = vrcp.f32 %v1661_v34  ;;  %v1658_v36 = vpop.xlane.xlu1 %1657 }
 0x593   : > { %4402 = vrcp.f32 %v1658_v36 }
 0x596   : > { %v1664_v38 = vpop.xlane.xlu1 %1663 }
 0x597   : > { %4404 = vrcp.f32 %v1664_v38 }
 0x59a   : > { %v1667_v39 = vpop.xlane.xlu0 %1666 }
 0x59b   : > { %4406 = vrcp.f32 %v1667_v39 }
 0x59c   : > { %v4401_v40 = vpop.eup %4400 }
 0x59d   : > { %v4403_v41 = vpop.eup %4402  ;;  %v1689_v42 = vmul.f32 %v4401_v40, %v4385_v6 }
 0x59e   : > { %v1676_v43 = vpop.xlane.xlu0 %1675  ;;  %v1670_v44 = vpop.xlane.xlu1 %1669  ;;  %v1688_v14 = vmul.f32 %v4403_v41, %v4387_v58 }
 0x59f   : > { %4408 = vrcp.f32 %v1676_v43 }
 0x5a0   : > { %4410 = vrcp.f32 %v1670_v44  ;;  %4088 = vmatprep.mubr.msk.f32.mxu0 %vm1607_vm15, %v1688_v14 }
 0x5a1   : > { %v4405_v47 = vpop.eup %4404  ;;  %4089 = vmatmul.mubr.msk.f32.vlgmr.msra.gmra.mrb[12].mxu0 %vm1607_vm15, %v1689_v42 }
 0x5a2   : > { %4097 = vmatpush3.msra.mxu0 %v5117_v62  ;;  %v1679_v48 = vpop.xlane.xlu0 %1678  ;;  %v1673_v51 = vpop.xlane.xlu1 %1672  ;;  %v1690_v53 = vmul.f32 %v4405_v47, %v4389_v13 }
 0x5a3   : > { %4412 = vrcp.f32 %v1679_v48 }
 0x5a4   : > { %4414 = vrcp.f32 %v1673_v51  ;;  %4093 = vmatprep.mubr.msk.f32.mxu1 %vm1607_vm15, %v1690_v53 }
 0x5a5   : > { %v4407_v54 = vpop.eup %4406 }
 0x5a6   : > { %v1691_v56 = vmul.f32 %v4407_v54, %v4391_v17  ;;  %v5236_v54 = vld [vmem:[%s5497_s5] sm:$0x3] }
 0x5a8   : > { %4094 = vmatmul.mubr.msk.f32.vlgmr.msra.gmra.mrb[12].mxu1 %vm1607_vm15, %v1691_v56 }
 0x5a9   : > { %v4409_v57 = vpop.eup %4408  ;;  %4102 = vmatpush3.msra.mxu1 %v5124_v63  ;;  %v532_v63 = vld [vmem:[#allocation9] sm:$0xff] }
 0x5aa   : > { %v4411_v0 = vpop.eup %4410  ;;  %v1694_v1 = vmul.f32 %v4409_v57, %v4393_v20  ;;  %4258 = vmatprep.subr.bf16.mxu1 %v4671_v3  ;;  %v4250_v59 = vpack.c.bf16 %v533_v52, %v532_v63 }
 0x5ab   : > { %v1692_v2 = vmul.f32 %v4411_v0, %v4395_v22 }
 0x5ac   : > { %4103 = vmatprep.mubr.msk.f32.mxu1 %vm1607_vm15, %v1694_v1  ;;  %4251 = vmatprep.subr.bf16.mxu0 %v4250_v59 }
 0x5ad   : > { %v4413_v62 = vpop.eup %4412  ;;  %4098 = vmatprep.mubr.msk.f32.mxu0 %vm1607_vm15, %v1692_v2 }
 0x5ae   : > { %v4415_v6 = vpop.eup %4414  ;;  %v1695_v45 = vmul.f32 %v4413_v62, %v4397_v29 }
 0x5af   : > { %v1693_v58 = vmul.f32 %v4415_v6, %v4399_v31 }
 0x5b0   : > { %4104 = vmatmul.mubr.msk.f32.vlgmr.msra.gmra.mrb[14].mxu1 %vm1607_vm15, %v1695_v45 }
 0x5b1   : > { %4099 = vmatmul.mubr.msk.f32.vlgmr.msra.gmra.mrb[14].mxu0 %vm1607_vm15, %v1693_v58  ;;  %4130 = vmatprep.mubr.msk.f32.mxu1 %vm4672_vm2, %v4673_v8 }
 0x5b2   : > { %4253 = vmatpush3.bf16.msra.mxu0 %v4250_v59 }
 0x5b3   : > { %4255 = vmatprep.subr.bf16.mxu0 %v4254_v60 }
 0x5b6   : > { %4257 = vmatpush3.bf16.msra.mxu0 %v4254_v60 }
 0x5b7   : > { %4266 = vmatprep.subr.bf16.mxu0 %v4671_v3 }
 0x674   : > { %v4090_v11 = vpop.f32.mrb[12].mxu0 }
 0x675   : > { %v2030_v12 = vmul.f32 1.442695, %v4090_v11  ;;  %v1768_v61 = vpop.f32.mrb[13].mxu0  ;;  %vm2021_vm4 = vcmp.gt.f32.partialorder %v4090_v11, 0.0 }
 0x676   : > { %v2028_v13 = vmul.f32 1.442695, %v1768_v61  ;;  %vm2020_vm14 = vcmp.gt.f32.partialorder %v1768_v61, 0.0 }
 0x677   : > { %4416 = vpow2.f32 %v2030_v12 }
 0x678   : > { %4418 = vpow2.f32 %v2028_v13 }
 0x67b   : > { %v4095_v7 = vpop.f32.mrb[12].mxu1 }
 0x67c   : > { %v2034_v16 = vmul.f32 1.442695, %v4095_v7  ;;  %v1849_v17 = vpop.f32.mrb[13].mxu1  ;;  %vm2023_vm8 = vcmp.gt.f32.partialorder %v4095_v7, 0.0 }
 0x67d   : > { %v2032_v18 = vmul.f32 1.442695, %v1849_v17  ;;  %vm2022_vm9 = vcmp.gt.f32.partialorder %v1849_v17, 0.0 }
 0x67e   : > { %4420 = vpow2.f32 %v2034_v16 }
 0x67f   : > { %4422 = vpow2.f32 %v2032_v18 }
 0x681   : > { %v4417_v20 = vpop.eup %4416 }
 0x682   : > { %v4419_v22 = vpop.eup %4418  ;;  %v3844_v24 = vadd.f32 -1.0, %v4417_v20 }
 0x683   : > { %v3843_v28 = vadd.f32 -1.0, %v4419_v22  ;;  %v4105_v29 = vpop.f32.mrb[14].mxu1 }
 0x684   : > { %v5210_v31 = vsel %vm2021_vm4, %v4090_v11, %v3844_v24  ;;  %v4100_v32 = vpop.f32.mrb[14].mxu0  ;;  %v2042_v33 = vmul.f32 1.442695, %v4105_v29  ;;  %v2011_v34 = vpop.f32.mrb[15].mxu1 }
 0x685   : > { %v2038_v36 = vmul.f32 1.442695, %v4100_v32  ;;  %v1930_v38 = vpop.f32.mrb[15].mxu0  ;;  %v5212_v39 = vsel %vm2020_vm14, %v1768_v61, %v3843_v28  ;;  %v2040_v41 = vmul.f32 1.442695, %v2011_v34  ;;  %vm2025_vm4 = vcmp.gt.f32.partialorder %v4100_v32, 0.0 }
 0x686   : > { %4424 = vpow2.f32 %v2042_v33  ;;  %v2036_v40 = vmul.f32 1.442695, %v1930_v38  ;;  %4114 = vmatprep.mubr.msk.f32.mxu0 %vm538_vm0, %v5212_v39  ;;  %v4259_v42 = vpack.c.bf16 %v5210_v31, %v5212_v39  ;;  %vm2027_vm14 = vcmp.gt.f32.partialorder %v4105_v29, 0.0 }
 0x687   : > { %4426 = vpow2.f32 %v2038_v36  ;;  %4115 = vmatmul.mubr.msk.f32.vlgmr.msra.gmra.mrb[16].mxu0 %vm538_vm0, %v5210_v31  ;;  %v2472_v61 = vstv %s3810_s4 }
 0x688   : > { %v4421_v43 = vpop.eup %4420  ;;  %4428 = vpow2.f32 %v2036_v40  ;;  %4261 = vmatpush3.bf16.xpose.msk.msra.mxu1 %vm4960_vm1, %v4259_v42 }
 0x689   : > { %v4423_v44 = vpop.eup %4422  ;;  %v3846_v14 = vadd.f32 -1.0, %v4421_v43  ;;  %4430 = vpow2.f32 %v2040_v41  ;;  %4262 = vmatprep.subr.bf16.mxu1 %v4671_v3 }
 0x68a   : > { %v3845_v47 = vadd.f32 -1.0, %v4423_v44 }
 0x68b   : > { %v5223_v48 = vsel %vm2023_vm8, %v4095_v7, %v3846_v14  ;;  %vm2024_vm8 = vcmp.gt.f32.partialorder %v1930_v38, 0.0 }
 0x68c   : > { %v5225_v51 = vsel %vm2022_vm9, %v1849_v17, %v3845_v47  ;;  %vm2026_vm9 = vcmp.gt.f32.partialorder %v2011_v34, 0.0 }
 0x68d   : > { %4117 = vmatprep.mubr.msk.f32.mxu0 %vm538_vm0, %v5225_v51  ;;  %v4263_v53 = vpack.c.bf16 %v5223_v48, %v5225_v51 }
 0x68e   : > { %4118 = vmatmul.mubr.msk.f32.gmra.mrb[18].mxu0 %vm538_vm0, %v5223_v48 }
 0x68f   : > { %4131 = vmatmul.mubr.msk.f32.vlgmr.msra.gmra.mrb[16].mxu1 %vm538_vm0, %v5236_v54 }
 0x690   : > { %v4425_v56 = vpop.eup %4424  ;;  %4265 = vmatpush3.bf16.xpose.msk.msra.mxu1 %vm4960_vm1, %v4263_v53  ;;  %4137 = vmatprep.mubr.msk.f32.mxu1 %vm4672_vm2, %v4673_v8 }
 0x691   : > { %v4427_v57 = vpop.eup %4426  ;;  %v3850_v0 = vadd.f32 -1.0, %v4425_v56  ;;  %4270 = vmatprep.subr.bf16.mxu1 %v4671_v3 }
 0x692   : > { %v4429_v1 = vpop.eup %4428  ;;  %v3848_v2 = vadd.f32 -1.0, %v4427_v57 }
 0x693   : > { %v4431_v62 = vpop.eup %4430  ;;  %v3847_v6 = vadd.f32 -1.0, %v4429_v1  ;;  %v5245_v45 = vsel %vm2027_vm14, %v4105_v29, %v3850_v0 }
 0x694   : > { %v3849_v58 = vadd.f32 -1.0, %v4431_v62  ;;  %v5247_v63 = vsel %vm2025_vm4, %v4100_v32, %v3848_v2 }
 0x695   : > { %v5249_v52 = vsel %vm2024_vm8, %v1930_v38, %v3847_v6  ;;  %vm5539_vm8 = vcmp.gt.f32.partialorder %v5134_v23, 0.0 }
 0x696   : > { %4120 = vmatprep.mubr.msk.f32.mxu0 %vm538_vm0, %v5249_v52  ;;  %v4267_v59 = vpack.c.bf16 %v5247_v63, %v5249_v52  ;;  %v5255_v9 = vsel %vm2026_vm9, %v2011_v34, %v3849_v58 }
 0x697   : > { %4121 = vmatmul.mubr.msk.f32.gmra.mrb[20].mxu0 %vm538_vm0, %v5247_v63  ;;  %v4271_v10 = vpack.c.bf16 %v5245_v45, %v5255_v9  ;;  %4138 = vmatmul.mubr.msk.f32.vlgmr.msra.gmra.mrb[18].mxu1 %vm538_vm0, %v5236_v54 }
 0x698   : > { %4123 = vmatprep.mubr.msk.f32.mxu0 %vm538_vm0, %v5255_v9  ;;  %4269 = vmatpush3.bf16.xpose.msk.msra.mxu0 %vm4960_vm1, %v4267_v59 }
 0x699   : > { %4273 = vmatpush3.bf16.xpose.msk.msra.mxu1 %vm4960_vm1, %v4271_v10  ;;  %4151 = vmatprep.mubr.msk.f32.mxu1 %vm4672_vm2, %v4673_v8 }
 0x69a   : > { %4274 = vmatprep.subr.bf16.mxu0 %v4671_v3  ;;  %4277 = vmatprep.subr.bf16.mxu1 %v4671_v3 }
 0x69b   : > { %4124 = vmatmul.mubr.msk.f32.gmra.mrb[22].mxu0 %vm538_vm0, %v5245_v45 }
 0x69c   : > { %4144 = vmatprep.mubr.msk.f32.mxu0 %vm4672_vm2, %v4673_v8 }
 0x69f   : > { %4145 = vmatmul.mubr.msk.f32.vlgmr.msra.gmra.mrb[24].mxu0 %vm538_vm0, %v5236_v54 }
 0x6a0   : > { %4152 = vmatmul.mubr.msk.f32.vlgmr.msra.gmra.mrb[20].mxu1 %vm538_vm0, %v5236_v54  ;;  %4158 = vmatprep.mubr.msk.f32.mxu0 %vm4672_vm2, %v4673_v8 }
 0x6a1   : > { %4165 = vmatprep.mubr.msk.f32.mxu1 %vm4672_vm2, %v4673_v8 }
 0x75a   : > { %v4116_v5 = vpop.f32.mrb[16].mxu0 }
 0x75b   : > { %v2150_v60 = vpop.f32.mrb[17].mxu0 }
 0x75c   : > { %v4275_v11 = vpack.c.bf16 %v4116_v5, %v2150_v60 }
 0x75e   : > { %4276 = vmatpush3.bf16.msra.mxu0 %v4275_v11 }
 0x75f   : > { %4280 = vmatprep.subr.bf16.mxu0 %v4671_v3 }
 0x761   : > { %v4119_v12 = vpop.f32.mrb[18].mxu0 }
 0x762   : > { %v2160_v13 = vpop.f32.mrb[19].mxu0  ;;  %v2258_v16 = vpop.f32.mrb[16].mxu1 }
 0x763   : > { %v4278_v7 = vpack.c.bf16 %v4119_v12, %v2160_v13  ;;  %v2473_v17 = vadd.f32 %v2472_v61, %v2258_v16  ;;  %v4132_v18 = vpop.f32.mrb[17].mxu1 }
 0x765   : > { %4279 = vmatpush3.bf16.msra.mxu1 %v4278_v7  ;;  %vm2477_vm1 = vcmp.gt.f32.partialorder %v2473_v17, 0.0  ;;  %v2481_v20 = vmul.f32 0.2, %v2473_v17 }
 0x766   : > { %4283 = vmatprep.subr.bf16.mxu1 %v4671_v3 }
 0x767   : > { %v2485_v22 = vsel %vm2477_vm1, %v2473_v17, %v2481_v20 }
 0x768   : > { %v2492_v24 = vrot.slane %v2485_v22, %v5037_v27 }
 0x76a   : > { %v5288_v28 = vpop.f32.mrb[20].mxu0  ;;  %v2328_v32 = vpop.f32.mrb[18].mxu1  ;;  %v2505_v33 = vsel %vm389_vm5, %v2492_v24, -9e+15 }
 0x76b   : > { %v5290_v29 = vpop.f32.mrb[21].mxu0  ;;  %v2474_v36 = vadd.f32 %v2472_v61, %v2328_v32  ;;  %v2509_v38 = vsel %vm883_vm6, %v2505_v33, -inf  ;;  %v4139_v40 = vpop.f32.mrb[19].mxu1 }
 0x76c   : > { %v4281_v34 = vpack.c.bf16 %v5288_v28, %v5290_v29  ;;  %2510 = vmax.xlane.f32.xlu1 %v2509_v38 }
 0x76d   : > { %vm2478_vm4 = vcmp.gt.f32.partialorder %v2474_v36, 0.0  ;;  %v2482_v3 = vmul.f32 0.2, %v2474_v36 }
 0x76e   : > { %v5297_v41 = vpop.f32.mrb[22].mxu0 }
 0x76f   : > { %v5299_v42 = vpop.f32.mrb[23].mxu0  ;;  %v2486_v44 = vsel %vm2478_vm4, %v2474_v36, %v2482_v3  ;;  %v2848_v3 = vrot.slane %v5236_v54, %v1222_v15  ;;  %vm5540_vm4 = vcmp.gt.f32.partialorder %v5139_v35, 0.0 }
 0x770   : > { %v4284_v43 = vpack.c.bf16 %v5297_v41, %v5299_v42  ;;  %v2496_v26 = vrot.slane %v2486_v44, %v5037_v27 }
 0x771   : > { %v2852_v15 = vmul.f32 %v2848_v3, %v5223_v48  ;;  %v2856_v48 = vmul.f32 %v2848_v3, %v5245_v45 }
 0x772   : > { %v2398_v14 = vpop.f32.mrb[24].mxu0  ;;  %v2506_v53 = vsel %vm390_vm7, %v2496_v26, -9e+15  ;;  %vm5537_vm7 = vcmp.gt.f32.partialorder %v5052_v49, 0.0 }
 0x773   : > { %v2468_v47 = vpop.f32.mrb[20].mxu1  ;;  %v2475_v56 = vadd.f32 %v2472_v61, %v2398_v14  ;;  %v2512_v0 = vsel %vm883_vm6, %v2506_v53, -inf  ;;  %v4146_v1 = vpop.f32.mrb[25].mxu0 }
 0x774   : > { %v2476_v57 = vadd.f32 %v2472_v61, %v2468_v47  ;;  %v4153_v2 = vpop.f32.mrb[21].mxu1  ;;  %2513 = vmax.xlane.f32.xlu0 %v2512_v0  ;;  %v2849_v47 = vmul.f32 %v2848_v3, %v5212_v39  ;;  %v2850_v0 = vmul.f32 %v2848_v3, %v5210_v31  ;;  %v2853_v39 = vmul.f32 %v2848_v3, %v5249_v52 }
 0x775   : > { %vm2479_vm5 = vcmp.gt.f32.partialorder %v2475_v56, 0.0  ;;  %v2483_v62 = vmul.f32 0.2, %v2475_v56  ;;  %v2866_v1 = vsel %vm538_vm0, %v2852_v15, 0.0  ;;  %v2854_v31 = vmul.f32 %v2848_v3, %v5247_v63 }
 0x776   : > { %vm2480_vm14 = vcmp.gt.f32.partialorder %v2476_v57, 0.0  ;;  %v2484_v6 = vmul.f32 0.2, %v2476_v57  ;;  %v2860_v54 = vsel %vm538_vm0, %v2850_v0, 0.0  ;;  %v2869_v2 = vsel %vm538_vm0, %v2853_v39, 0.0 }
 0x777   : > { %v2487_v58 = vsel %vm2479_vm5, %v2475_v56, %v2483_v62  ;;  %v2851_v56 = vmul.f32 %v2848_v3, %v5225_v51  ;;  %v2855_v51 = vmul.f32 %v2848_v3, %v5255_v9  ;;  %v2878_v52 = vsel %vm538_vm0, %v2856_v48, 0.0 }
 0x778   : > { %v2488_v59 = vsel %vm2480_vm14, %v2476_v57, %v2484_v6  ;;  %v2500_v10 = vrot.slane %v2487_v58, %v5037_v27  ;;  %v2857_v57 = vsel %vm538_vm0, %v2849_v47, 0.0  ;;  %v2872_v6 = vsel %vm538_vm0, %v2854_v31, 0.0 }
 0x779   : > { %v2504_v5 = vrot.slane %v2488_v59, %v5037_v27  ;;  %v2863_v19 = vsel %vm538_vm0, %v2851_v56, 0.0  ;;  %v2875_v62 = vsel %vm538_vm0, %v2855_v51, 0.0  ;;  %vm5541_vm5 = vcmp.gt.f32.partialorder %v5152_v50, 0.0 }
 0x77a   : > { %v2507_v30 = vsel %vm391_vm10, %v2500_v10, -9e+15  ;;  %vm5538_vm10 = vcmp.gt.f32.partialorder %v5132_v21, 0.0 }
 0x77b   : > { %v2508_v60 = vsel %vm5537_vm7, %v2504_v5, -9e+15  ;;  %v2515_v11 = vsel %vm883_vm6, %v2507_v30, -inf }
 0x77c   : > { %v2518_v12 = vsel %vm883_vm6, %v2508_v60, -inf  ;;  %2516 = vmax.xlane.f32.xlu1 %v2515_v11 }
 0x77d   : > { %2519 = vmax.xlane.f32.xlu0 %v2518_v12 }
 0x7f9   : > { %v2511_v61 = vpop.xlane.xlu1 %2510 }
 0x7fa   : > { %v2521_v13 = vsub.f32 %v2505_v33, %v2511_v61 }
 0x7fc   : > { %v2525_v7 = vmul.f32 1.442695, %v2521_v13 }
 0x7fe   : > { %4432 = vpow2.f32 %v2525_v7 }
 0x801   : > { %v2514_v16 = vpop.xlane.xlu0 %2513 }
 0x802   : > { %v2522_v17 = vsub.f32 %v2506_v53, %v2514_v16 }
 0x804   : > { %v2527_v18 = vmul.f32 1.442695, %v2522_v17 }
 0x806   : > { %4434 = vpow2.f32 %v2527_v18 }
 0x808   : > { %v4433_v20 = vpop.eup %4432 }
 0x809   : > { %v2517_v46 = vpop.xlane.xlu1 %2516  ;;  %v2533_v49 = vsel %vm883_vm6, %v4433_v20, 0.0 }
 0x80a   : > { %v2520_v22 = vpop.xlane.xlu0 %2519  ;;  %v2523_v24 = vsub.f32 %v2507_v30, %v2517_v46  ;;  %2534 = vadd.xlane.f32.xlu1 %v2533_v49 }
 0x80b   : > { %v2524_v32 = vsub.f32 %v2508_v60, %v2520_v22 }
 0x80c   : > { %v2529_v36 = vmul.f32 1.442695, %v2523_v24 }
 0x80d   : > { %v2531_v38 = vmul.f32 1.442695, %v2524_v32 }
 0x80e   : > { %4436 = vpow2.f32 %v2529_v36 }
 0x80f   : > { %4438 = vpow2.f32 %v2531_v38 }
 0x810   : > { %v4435_v40 = vpop.eup %4434 }
 0x811   : > { %v2536_v33 = vsel %vm883_vm6, %v4435_v40, 0.0 }
 0x812   : > { %2537 = vadd.xlane.f32.xlu0 %v2536_v33 }
 0x818   : > { %v4437_v44 = vpop.eup %4436 }
 0x819   : > { %v4439_v26 = vpop.eup %4438  ;;  %v2539_v14 = vsel %vm883_vm6, %v4437_v44, 0.0 }
 0x81a   : > { %2540 = vadd.xlane.f32.xlu1 %v2539_v14  ;;  %v2542_v53 = vsel %vm883_vm6, %v4439_v26, 0.0 }
 0x81b   : > { %2543 = vadd.xlane.f32.xlu0 %v2542_v53 }
 0x81e   : > { %2858 = vadd.xlane.f32.xlu1 %v2857_v57 }
 0x81f   : > { %2864 = vadd.xlane.f32.xlu0 %v2863_v19 }
 0x822   : > { %2861 = vadd.xlane.f32.xlu1 %v2860_v54 }
 0x823   : > { %2867 = vadd.xlane.f32.xlu0 %v2866_v1 }
 0x826   : > { %2870 = vadd.xlane.f32.xlu1 %v2869_v2 }
 0x827   : > { %2876 = vadd.xlane.f32.xlu0 %v2875_v62 }
 0x82a   : > { %2873 = vadd.xlane.f32.xlu1 %v2872_v6 }
 0x82b   : > { %2879 = vadd.xlane.f32.xlu0 %v2878_v52 }
 0x897   : > { %v2535_v58 = vpop.xlane.xlu1 %2534 }
 0x898   : > { %4440 = vrcp.f32 %v2535_v58 }
 0x89f   : > { %v2538_v9 = vpop.xlane.xlu0 %2537 }
 0x8a0   : > { %4442 = vrcp.f32 %v2538_v9 }
 0x8a2   : > { %v4441_v59 = vpop.eup %4440 }
 0x8a3   : > { %v2549_v10 = vmul.f32 %v4441_v59, %v4433_v20 }
 0x8a5   : > { %4159 = vmatmul.mubr.msk.f32.vlgmr.msra.gmra.mrb[26].mxu0 %vm883_vm6, %v2549_v10 }
 0x8a6   : > { %4282 = vmatpush3.bf16.msra.mxu0 %v4281_v34  ;;  %4172 = vmatprep.mubr.msk.f32.mxu0 %vm4672_vm2, %v4673_v8 }
 0x8a7   : > { %v2541_v45 = vpop.xlane.xlu1 %2540  ;;  %4182 = vmatprep.subr.mxu0 %v4673_v8 }
 0x8a8   : > { %4444 = vrcp.f32 %v2541_v45  ;;  %v2544_v63 = vpop.xlane.xlu0 %2543 }
 0x8a9   : > { %4446 = vrcp.f32 %v2544_v63 }
 0x8aa   : > { %v4443_v5 = vpop.eup %4442 }
 0x8ab   : > { %v2550_v30 = vmul.f32 %v4443_v5, %v4435_v40 }
 0x8ac   : > { %v2865_v18 = vpop.xlane.xlu0 %2864 }
 0x8ad   : > { %4166 = vmatmul.mubr.msk.f32.vlgmr.msra.gmra.mrb[22].mxu1 %vm883_vm6, %v2550_v30 }
 0x8ae   : > { %4285 = vmatpush3.bf16.msra.mxu1 %v4284_v43  ;;  %4179 = vmatprep.mubr.msk.f32.mxu1 %vm4672_vm2, %v4673_v8  ;;  %v531_v43 = vld [vmem:[%s5498_s6] sm:$0x1] }
 0x8af   : > { %4187 = vmatprep.subr.mxu1 %v4673_v8 }
 0x8b0   : > { %v2868_v38 = vpop.xlane.xlu0 %2867 }
 0x8b2   : > { %v4445_v28 = vpop.eup %4444 }
 0x8b3   : > { %v4447_v29 = vpop.eup %4446  ;;  %v2551_v34 = vmul.f32 %v4445_v28, %v4437_v44 }
 0x8b4   : > { %v2552_v60 = vmul.f32 %v4447_v29, %v4439_v26  ;;  %v2877_v15 = vpop.xlane.xlu0 %2876 }
 0x8b5   : > { %4173 = vmatmul.mubr.msk.f32.vlgmr.msra.gmra.mrb[28].mxu0 %vm883_vm6, %v2551_v34 }
 0x8b6   : > { %4180 = vmatmul.mubr.msk.f32.vlgmr.msra.gmra.mrb[24].mxu1 %vm883_vm6, %v2552_v60  ;;  %4184 = vmatprep.mubr.msk.f32.mxu0 %vm4672_vm2, %v4673_v8 }
 0x8b7   : > { %4189 = vmatprep.mubr.msk.f32.mxu1 %vm4672_vm2, %v4673_v8 }
 0x8b8   : > { %v2880_v59 = vpop.xlane.xlu0 %2879 }
 0x978   : > { %v2622_v41 = vpop.f32.mrb[26].mxu0 }
 0x979   : > { %v4160_v42 = vpop.f32.mrb[27].mxu0  ;;  %4183 = vmatpush3.xpose.msk.msra.mxu0 %vm538_vm0, %v2622_v41 }
 0x97a   : > { %4192 = vmatprep.subr.mxu0 %v4673_v8 }
 0x97c   : > { %4185 = vmatmul.mubr.msk.f32.vlgmr.msra.gmra.mrb[30].mxu0 %vm538_vm0, %v531_v43 }
 0x97d   : > { %4194 = vmatprep.mubr.msk.f32.mxu0 %vm4672_vm2, %v4673_v8 }
 0x980   : > { %v2695_v11 = vpop.f32.mrb[22].mxu1 }
 0x981   : > { %v4167_v12 = vpop.f32.mrb[23].mxu1  ;;  %4188 = vmatpush3.xpose.msk.msra.mxu1 %vm538_vm0, %v2695_v11 }
 0x982   : > { %4197 = vmatprep.subr.mxu1 %v4673_v8 }
 0x984   : > { %4190 = vmatmul.mubr.msk.f32.vlgmr.msra.gmra.mrb[26].mxu1 %vm538_vm0, %v531_v43 }
 0x985   : > { %4199 = vmatprep.mubr.msk.f32.mxu1 %vm4672_vm2, %v4673_v8  ;;  %v2859_v8 = vpop.xlane.xlu1 %2858 }
 0x988   : > { %v5371_v61 = vpop.f32.mrb[28].mxu0 }
 0x989   : > { %v4174_v13 = vpop.f32.mrb[29].mxu0  ;;  %v5373_v7 = vpop.f32.mrb[24].mxu1  ;;  %4193 = vmatpush3.xpose.msk.msra.mxu0 %vm538_vm0, %v5371_v61 }
 0x98a   : > { %v4181_v16 = vpop.f32.mrb[25].mxu1  ;;  %4198 = vmatpush3.xpose.msk.msra.mxu1 %vm538_vm0, %v5373_v7  ;;  %4202 = vmatprep.subr.mxu0 %v2622_v41  ;;  %v2862_v22 = vpop.xlane.xlu1 %2861 }
 0x98b   : > { %4207 = vmatprep.subr.mxu1 %v2695_v11 }
 0x98c   : > { %4195 = vmatmul.mubr.msk.f32.vlgmr.msra.gmra.mrb[32].mxu0 %vm538_vm0, %v531_v43 }
 0x98d   : > { %4200 = vmatmul.mubr.msk.f32.vlgmr.msra.gmra.mrb[28].mxu1 %vm538_vm0, %v531_v43  ;;  %4203 = vmatpush3.msra.mxu0 %v2622_v41 }
 0x98e   : > { %4208 = vmatpush3.msra.mxu1 %v2695_v11  ;;  %4212 = vmatprep.subr.mxu0 %v5371_v61  ;;  %v2871_v0 = vpop.xlane.xlu1 %2870 }
 0x98f   : > { %4217 = vmatprep.subr.mxu1 %v5373_v7 }
 0x992   : > { %v2874_v52 = vpop.xlane.xlu1 %2873 }
 0xa4f   : > { %v2953_v17 = vpop.f32.mrb[30].mxu0 }
 0xa50   : > { %v3179_v20 = vrot.slane %v2953_v17, %v5037_v27  ;;  %v4186_v46 = vpop.f32.mrb[31].mxu0 }
 0xa52   : > { %v3192_v49 = vadd.f32 %v3179_v20, %v2859_v8  ;;  %v3193_v24 = vadd.f32 %v3179_v20, %v2862_v22 }
 0xa54   : > { %vm3200_vm2 = vcmp.gt.f32.partialorder %v3192_v49, 0.0  ;;  %v3208_v32 = vmul.f32 0.2, %v3192_v49  ;;  %vm3201_vm6 = vcmp.gt.f32.partialorder %v3193_v24, 0.0  ;;  %v3209_v36 = vmul.f32 0.2, %v3193_v24 }
 0xa56   : > { %v3216_v40 = vsel %vm3200_vm2, %v3192_v49, %v3208_v32  ;;  %v3217_v33 = vsel %vm3201_vm6, %v3193_v24, %v3209_v36 }
 0xa57   : > { %v3026_v3 = vpop.f32.mrb[26].mxu1  ;;  %v3224_v44 = vsel %vm5538_vm10, %v3216_v40, -9e+15  ;;  %v5390_v47 = vsel %vm5539_vm8, %v3217_v33, -9e+15 }
 0xa58   : > { %v3183_v26 = vrot.slane %v3026_v3, %v5037_v27  ;;  %v3232_v14 = vsel %vm1607_vm15, %v3224_v44, -inf  ;;  %v4191_v53 = vpop.f32.mrb[27].mxu1  ;;  %v3235_v19 = vsel %vm1607_vm15, %v5390_v47, -inf }
 0xa59   : > { %3233 = vmax.xlane.f32.xlu1 %v3232_v14 }
 0xa5a   : > { %v3194_v56 = vadd.f32 %v3183_v26, %v2865_v18  ;;  %v3195_v57 = vadd.f32 %v3183_v26, %v2868_v38 }
 0xa5c   : > { %vm3202_vm9 = vcmp.gt.f32.partialorder %v3194_v56, 0.0  ;;  %v3210_v21 = vmul.f32 0.2, %v3194_v56  ;;  %vm3203_vm1 = vcmp.gt.f32.partialorder %v3195_v57, 0.0  ;;  %v3211_v54 = vmul.f32 0.2, %v3195_v57 }
 0xa5d   : > { %3236 = vmax.xlane.f32.xlu1 %v3235_v19 }
 0xa5e   : > { %v3218_v39 = vsel %vm3202_vm9, %v3194_v56, %v3210_v21  ;;  %v3219_v1 = vsel %vm3203_vm1, %v3195_v57, %v3211_v54 }
 0xa5f   : > { %v3099_v51 = vpop.f32.mrb[32].mxu0  ;;  %v3226_v23 = vsel %vm5540_vm4, %v3218_v39, -9e+15  ;;  %v3227_v48 = vsel %vm5541_vm5, %v3219_v1, -9e+15 }
 0xa60   : > { %v3187_v2 = vrot.slane %v3099_v51, %v5037_v27  ;;  %v3172_v31 = vpop.f32.mrb[28].mxu1  ;;  %v3238_v62 = vsel %vm1607_vm15, %v3226_v23, -inf  ;;  %v4196_v6 = vpop.f32.mrb[33].mxu0  ;;  %v3241_v5 = vsel %vm1607_vm15, %v3227_v48, -inf }
 0xa61   : > { %v3191_v58 = vrot.slane %v3172_v31, %v5037_v27  ;;  %3239 = vmax.xlane.f32.xlu0 %v3238_v62  ;;  %v4201_v9 = vpop.f32.mrb[29].mxu1 }
 0xa62   : > { %v3196_v10 = vadd.f32 %v3187_v2, %v2871_v0  ;;  %v3197_v45 = vadd.f32 %v3187_v2, %v2874_v52 }
 0xa63   : > { %v3198_v63 = vadd.f32 %v3191_v58, %v2877_v15  ;;  %v3199_v35 = vadd.f32 %v3191_v58, %v2880_v59 }
 0xa64   : > { %vm3204_vm14 = vcmp.gt.f32.partialorder %v3196_v10, 0.0  ;;  %v3212_v30 = vmul.f32 0.2, %v3196_v10  ;;  %vm3205_vm7 = vcmp.gt.f32.partialorder %v3197_v45, 0.0  ;;  %v3213_v28 = vmul.f32 0.2, %v3197_v45 }
 0xa65   : > { %3242 = vmax.xlane.f32.xlu0 %v3241_v5  ;;  %vm3206_vm2 = vcmp.gt.f32.partialorder %v3198_v63, 0.0  ;;  %v3214_v50 = vmul.f32 0.2, %v3198_v63  ;;  %vm3207_vm6 = vcmp.gt.f32.partialorder %v3199_v35, 0.0  ;;  %v3215_v29 = vmul.f32 0.2, %v3199_v35 }
 0xa66   : > { %v3220_v34 = vsel %vm3204_vm14, %v3196_v10, %v3212_v30  ;;  %v3221_v27 = vsel %vm3205_vm7, %v3197_v45, %v3213_v28 }
 0xa67   : > { %v3228_v60 = vsel %vm525_vm3, %v3220_v34, -9e+15  ;;  %v3222_v41 = vsel %vm3206_vm2, %v3198_v63, %v3214_v50  ;;  %v3223_v42 = vsel %vm3207_vm6, %v3199_v35, %v3215_v29  ;;  %v3229_v13 = vsel %vm526_vm13, %v3221_v27, -9e+15 }
 0xa68   : > { %v3244_v43 = vsel %vm1607_vm15, %v3228_v60, -inf  ;;  %v3230_v11 = vsel %vm527_vm12, %v3222_v41, -9e+15  ;;  %v3231_v16 = vsel %vm528_vm11, %v3223_v42, -9e+15  ;;  %v3247_v25 = vsel %vm1607_vm15, %v3229_v13, -inf }
 0xa69   : > { %3245 = vmax.xlane.f32.xlu1 %v3244_v43  ;;  %v3250_v12 = vsel %vm1607_vm15, %v3230_v11, -inf  ;;  %v3253_v8 = vsel %vm1607_vm15, %v3231_v16, -inf }
 0xa6a   : > { %3251 = vmax.xlane.f32.xlu0 %v3250_v12 }
 0xa6d   : > { %3248 = vmax.xlane.f32.xlu1 %v3247_v25 }
 0xa6e   : > { %3254 = vmax.xlane.f32.xlu0 %v3253_v8 }
 0xae6   : > { %v3234_v17 = vpop.xlane.xlu1 %3233 }
 0xae7   : > { %v3256_v18 = vsub.f32 %v3224_v44, %v3234_v17 }
 0xae9   : > { %v3264_v55 = vmul.f32 1.442695, %v3256_v18 }
 0xaea   : > { %v3237_v20 = vpop.xlane.xlu1 %3236 }
 0xaeb   : > { %4448 = vpow2.f32 %v3264_v55  ;;  %v3257_v46 = vsub.f32 %v5390_v47, %v3237_v20 }
 0xaed   : > { %v3266_v22 = vmul.f32 1.442695, %v3257_v46 }
 0xaee   : > { %v3240_v37 = vpop.xlane.xlu0 %3239 }
 0xaef   : > { %4450 = vpow2.f32 %v3266_v22  ;;  %v3258_v49 = vsub.f32 %v3226_v23, %v3240_v37 }
 0xaf1   : > { %v3268_v24 = vmul.f32 1.442695, %v3258_v49 }
 0xaf2   : > { %v3243_v4 = vpop.xlane.xlu0 %3242 }
 0xaf3   : > { %4452 = vpow2.f32 %v3268_v24  ;;  %v3259_v32 = vsub.f32 %v3227_v48, %v3243_v4 }
 0xaf5   : > { %v4449_v36 = vpop.eup %4448  ;;  %v3270_v38 = vmul.f32 1.442695, %v3259_v32 }
 0xaf6   : > { %v3246_v40 = vpop.xlane.xlu1 %3245  ;;  %v3280_v33 = vsel %vm1607_vm15, %v4449_v36, 0.0 }
 0xaf7   : > { %4454 = vpow2.f32 %v3270_v38  ;;  %v3260_v3 = vsub.f32 %v3228_v60, %v3246_v40  ;;  %v3252_v44 = vpop.xlane.xlu0 %3251  ;;  %3281 = vadd.xlane.f32.xlu1 %v3280_v33 }
 0xaf8   : > { %v3262_v26 = vsub.f32 %v3230_v11, %v3252_v44 }
 0xaf9   : > { %v4451_v14 = vpop.eup %4450  ;;  %v3272_v47 = vmul.f32 1.442695, %v3260_v3 }
 0xafa   : > { %v3276_v53 = vmul.f32 1.442695, %v3262_v26  ;;  %v3249_v56 = vpop.xlane.xlu1 %3248  ;;  %v3283_v57 = vsel %vm1607_vm15, %v4451_v14, 0.0 }
 0xafb   : > { %4456 = vpow2.f32 %v3272_v47  ;;  %v3261_v0 = vsub.f32 %v3229_v13, %v3249_v56  ;;  %v3255_v19 = vpop.xlane.xlu0 %3254  ;;  %3284 = vadd.xlane.f32.xlu1 %v3283_v57 }
 0xafc   : > { %4458 = vpow2.f32 %v3276_v53  ;;  %v3263_v15 = vsub.f32 %v3231_v16, %v3255_v19 }
 0xafd   : > { %v4453_v21 = vpop.eup %4452  ;;  %v3274_v54 = vmul.f32 1.442695, %v3261_v0 }
 0xafe   : > { %v3278_v39 = vmul.f32 1.442695, %v3263_v15  ;;  %v3286_v1 = vsel %vm1607_vm15, %v4453_v21, 0.0 }
 0xaff   : > { %4460 = vpow2.f32 %v3274_v54  ;;  %3287 = vadd.xlane.f32.xlu0 %v3286_v1 }
 0xb00   : > { %4462 = vpow2.f32 %v3278_v39 }
 0xb01   : > { %v4455_v51 = vpop.eup %4454 }
 0xb02   : > { %v3289_v23 = vsel %vm1607_vm15, %v4455_v51, 0.0 }
 0xb03   : > { %3290 = vadd.xlane.f32.xlu0 %v3289_v23 }
 0xb05   : > { %v4457_v2 = vpop.eup %4456 }
 0xb06   : > { %v4459_v31 = vpop.eup %4458  ;;  %v3292_v62 = vsel %vm1607_vm15, %v4457_v2, 0.0 }
 0xb07   : > { %3293 = vadd.xlane.f32.xlu1 %v3292_v62  ;;  %v3298_v48 = vsel %vm1607_vm15, %v4459_v31, 0.0 }
 0xb08   : > { %3299 = vadd.xlane.f32.xlu0 %v3298_v48 }
 0xb09   : > { %v4461_v6 = vpop.eup %4460 }
 0xb0a   : > { %v4463_v52 = vpop.eup %4462  ;;  %v3295_v58 = vsel %vm1607_vm15, %v4461_v6, 0.0 }
 0xb0b   : > { %3296 = vadd.xlane.f32.xlu1 %v3295_v58  ;;  %v3301_v9 = vsel %vm1607_vm15, %v4463_v52, 0.0 }
 0xb0c   : > { %3302 = vadd.xlane.f32.xlu0 %v3301_v9 }
 0xb84   : > { %v3282_v59 = vpop.xlane.xlu1 %3281 }
 0xb85   : > { %4464 = vrcp.f32 %v3282_v59 }
 0xb88   : > { %v3285_v10 = vpop.xlane.xlu1 %3284 }
 0xb89   : > { %4466 = vrcp.f32 %v3285_v10 }
 0xb8c   : > { %v3288_v45 = vpop.xlane.xlu0 %3287 }
 0xb8d   : > { %4468 = vrcp.f32 %v3288_v45 }
 0xb8f   : > { %v4465_v63 = vpop.eup %4464 }
 0xb90   : > { %v3291_v35 = vpop.xlane.xlu0 %3290  ;;  %v3312_v5 = vmul.f32 %v4465_v63, %v4449_v36 }
 0xb91   : > { %4470 = vrcp.f32 %v3291_v35 }
 0xb92   : > { %4204 = vmatprep.mubr.msk.f32.mxu0 %vm1607_vm15, %v3312_v5 }
 0xb93   : > { %v4467_v30 = vpop.eup %4466 }
 0xb94   : > { %v3313_v28 = vmul.f32 %v4467_v30, %v4451_v14  ;;  %v3294_v50 = vpop.xlane.xlu1 %3293 }
 0xb95   : > { %4472 = vrcp.f32 %v3294_v50  ;;  %v3300_v29 = vpop.xlane.xlu0 %3299 }
 0xb96   : > { %4474 = vrcp.f32 %v3300_v29  ;;  %4205 = vmatmul.mubr.msk.f32.vlgmr.msra.gmra.mrb[34].mxu0 %vm1607_vm15, %v3313_v28 }
 0xb97   : > { %v4469_v34 = vpop.eup %4468  ;;  %4213 = vmatpush3.msra.mxu0 %v5371_v61 }
 0xb98   : > { %v3297_v27 = vpop.xlane.xlu1 %3296  ;;  %v3314_v60 = vmul.f32 %v4469_v34, %v4453_v21 }
 0xb99   : > { %4476 = vrcp.f32 %v3297_v27  ;;  %v3303_v41 = vpop.xlane.xlu0 %3302 }
 0xb9a   : > { %4478 = vrcp.f32 %v3303_v41  ;;  %4209 = vmatprep.mubr.msk.f32.mxu1 %vm1607_vm15, %v3314_v60 }
 0xb9b   : > { %v4471_v42 = vpop.eup %4470 }
 0xb9c   : > { %v3315_v43 = vmul.f32 %v4471_v42, %v4455_v51 }
 0xb9e   : > { %4210 = vmatmul.mubr.msk.f32.vlgmr.msra.gmra.mrb[30].mxu1 %vm1607_vm15, %v3315_v43 }
 0xb9f   : > { %v4473_v11 = vpop.eup %4472  ;;  %4218 = vmatpush3.msra.mxu1 %v5373_v7 }
 0xba0   : > { %v4475_v12 = vpop.eup %4474  ;;  %v3316_v13 = vmul.f32 %v4473_v11, %v4457_v2 }
 0xba1   : > { %v3318_v16 = vmul.f32 %v4475_v12, %v4459_v31 }
 0xba2   : > { %4214 = vmatprep.mubr.msk.f32.mxu0 %vm1607_vm15, %v3316_v13 }
 0xba3   : > { %v4477_v61 = vpop.eup %4476  ;;  %4219 = vmatprep.mubr.msk.f32.mxu1 %vm1607_vm15, %v3318_v16 }
 0xba4   : > { %v4479_v25 = vpop.eup %4478  ;;  %v3317_v8 = vmul.f32 %v4477_v61, %v4461_v6 }
 0xba5   : > { %v3319_v17 = vmul.f32 %v4479_v25, %v4463_v52 }
 0xba6   : > { %4215 = vmatmul.mubr.msk.f32.vlgmr.msra.gmra.mrb[36].mxu0 %vm1607_vm15, %v3317_v8 }
 0xba7   : > { %4220 = vmatmul.mubr.msk.f32.vlgmr.msra.gmra.mrb[32].mxu1 %vm1607_vm15, %v3319_v17 }
 0xc69   : > { %v4206_v18 = vpop.f32.mrb[34].mxu0 }
 0xc6a   : > { %v3645_v55 = vsel %vm538_vm0, %v4206_v18, 0.0  ;;  %v3392_v7 = vpop.f32.mrb[35].mxu0 }
 0xc6b   : > { %3653 = vst [vmem:[%s365_s16 + $0x8] sm:$0xff] %v3645_v55  ;;  %v3644_v20 = vsel %vm538_vm0, %v3392_v7, 0.0 }
 0xc6c   : > { %3652 = vst [vmem:[%s365_s16] sm:$0xff] %v3644_v20 }
 0xc71   : > { %v4211_v46 = vpop.f32.mrb[30].mxu1 }
 0xc72   : > { %v3647_v22 = vsel %vm538_vm0, %v4211_v46, 0.0  ;;  %v3473_v37 = vpop.f32.mrb[31].mxu1 }
 0xc73   : > { %3655 = vst [vmem:[%s365_s16 + $0x18] sm:$0xff] %v3647_v22  ;;  %v3646_v49 = vsel %vm538_vm0, %v3473_v37, 0.0 }
 0xc74   : > { %3654 = vst [vmem:[%s365_s16 + $0x10] sm:$0xff] %v3646_v49 }
 0xc79   : > { %v4216_v24 = vpop.f32.mrb[36].mxu0 }
 0xc7a   : > { %v3649_v4 = vsel %vm538_vm0, %v4216_v24, 0.0  ;;  %v3554_v32 = vpop.f32.mrb[37].mxu0  ;;  %v4221_v36 = vpop.f32.mrb[32].mxu1 }
 0xc7b   : > { %3657 = vst [vmem:[%s365_s16 + $0x28] sm:$0xff] %v3649_v4  ;;  %v3648_v38 = vsel %vm538_vm0, %v3554_v32, 0.0  ;;  %v3651_v40 = vsel %vm538_vm0, %v4221_v36, 0.0  ;;  %v3635_v33 = vpop.f32.mrb[33].mxu1 }
 0xc7c   : > { %3656 = vst [vmem:[%s365_s16 + $0x20] sm:$0xff] %v3648_v38  ;;  %3659 = vst [vmem:[%s365_s16 + $0x38] sm:$0xff] %v3651_v40  ;;  %v3650_v3 = vsel %vm538_vm0, %v3635_v33, 0.0 }
 0xc7d   : > { %3658 = vst [vmem:[%s365_s16 + $0x30] sm:$0xff] %v3650_v3 }
 0xc7e   : > { %4596 = shalt.err (!%p4593_p11)
}
 0xc7f   : > { %s4597_s30 = scalar_lea.hbm %s5444_s13, 1024  ;;  %s4601_s17 = scalar_lea.hbm %s5499_s7, 4096 }
 0xc80   : > { %p4598_p2 = scmp.ne.s32.totalorder %s5444_s13, %s4597_s30  ;;  %p4602_p1 = scmp.lt.u32.totalorder %s5444_s13, %s5499_s7 }
 0xc81   : > { %p4603_p4 = scmp.lt.u32.totalorder %s4601_s17, %s4597_s30  ;;  %p4605_p13 = scmp.lt.u32.totalorder %s4597_s30, %s5444_s13 }
 0xc82   : > { %p4599_p3 = pnand %p4598_p2, %p4820_p7 }
 0xc83   : > { %p4604_p8 = por %p4603_p4, %p4602_p1 }
 0xc84   : > { %p4600_p10 = pneg %p4599_p3 }
 0xc85   : > { %p4606_p12 = por %p4605_p13, %p4604_p8 }
 0xc87   : > { %p4607_p6 = pnand %p4606_p12, %p4600_p10 }
 0xc89   : > { %4610 = shalt.err (!%p4607_p6)
}
 0xc8a   : > { %s4675_s29 = smov 128   ;;  %s4676_s12 = smov 8  }
 0xc8b   : > { %4299 = dma.vmem_to_hbm [thread:$0]  (%p4820_p7), %s5446_s14, 1024, %s5444_s13, %s3661_s28, %s4675_s29, %s4675_s29, %s4676_s12  }
 0xc8c PF: > { %p4324_p0 = scmp.ge.s32.totalorder %s4661_s27, 2  ;;  %s3690_s16 = sand.u32 1, %s4649_s24  }
 0xc8d   : > { %p5542_p5 = scmp.ne.s32.totalorder %s5516_s8, 0  ;;  %s3691_s26 = scalar_lea.sflag [#allocation4], %s3690_s16 }
 0xc8f   : > { %p4316_p9 = pnand %p4324_p0, %p5542_p5 }
 0xc91   : > { %4644 = dma.done.wait (!%p4316_p9), %s3691_s26, 1024  }
 0xc92   : > { %4646 = vsyncadd (!%p4316_p9), %s3691_s26, 4294966272  ;;  %s5543_s2 = sld [smem:[#allocation16_spill]]  ;;  %s5544_s26 = sld [smem:[#allocation17_spill]] }
 0xc93   : > { %p24_p11 = scmp.ge.s32.totalorder %s4810_s11, 6   ;;  %s5545_s24 = smov %s4653_s25 }
 0xc94   : > { %s5547_s27 = smov %s4810_s11 }
 0xc95   :  { %26 = sbr.rel (!%p24_p11) target bundleno = 12 (0xc), region = 115 }
 0xc98   : > { %s5546_s25 = smov %s5543_s2 }
 0xc9c   :  { %3696 = vsyncpa [#allocation3], 1 }
 0xc9d   :  { %3698 = vsyncpa [#allocation3 + $0x1], 1 }
 0xc9e   :  { %3699 = vsyncpa [#allocation7], 1 }
 0xc9f   :  { %3701 = vsyncpa [#allocation7 + $0x1], 1 }
 0xca0   :  { %3702 = vsyncpa [#allocation4], 1 }
 0xca1   :  { %3704 = vsyncpa [#allocation4 + $0x1], 1 }
 0xca2   :  { %3705 = vsyncpa [#allocation5], 1 }
 0xca3   :  { %3707 = vsyncpa [#allocation5 + $0x1], 1 }

</bundles_post_ra>
